<compile_context>
chip_gen: v5e
topology: v5e:2x2
jax: 0.10.0
libtpu: 0.0.40
codegen_flags: <defaults>
</compile_context>

<pallas_src>
import functools
import math

import jax
import jax.numpy as jnp
import numpy as np
from jax import lax
from jax.experimental import pallas as pl
from jax.experimental.pallas import tpu as pltpu


def _layernorm(x, gamma, beta, eps=1e-5):
    mean = jnp.mean(x, axis=-1, keepdims=True)
    var = jnp.mean((x - mean) ** 2, axis=-1, keepdims=True)
    return (x - mean) * lax.rsqrt(var + eps) * gamma + beta


def encoder_layer_kernel(
    x_q_ref, x_kv_ref, mask_ref,
    wq_ref, wk_ref, wv_ref, bq_ref, bk_ref, bv_ref,
    wo_ref, bo_ref, ln1_g_ref, ln1_b_ref,
    w1_ref, b1_ref, w2_ref, b2_ref, ln2_g_ref, ln2_b_ref,
    out_ref, attn_ref,
    *, num_heads, dim_k):
    H = num_heads
    TQ, D = x_q_ref.shape[1], x_q_ref.shape[2]
    S = x_kv_ref.shape[1]

    # f32 copy of the query tile for the residual / LayerNorm path.
    x_q_f32 = x_q_ref[0].astype(jnp.float32)                        # (TQ, D)
    # bf16 copies broadcast over heads -> all projections are one batched
    # MXU dot_general each (same FLOPs as a fused wide matmul, no dk-slicing).
    xq_b = jnp.broadcast_to(x_q_ref[0].astype(jnp.bfloat16)[None], (H, TQ, D))
    xkv_b = jnp.broadcast_to(x_kv_ref[0].astype(jnp.bfloat16)[None], (H, S, D))

    inv_scale = jnp.float32(1.0 / math.sqrt(dim_k))
    # Reference: softmax((q k^T + mask * -1e9) / sqrt(dk)); fold scale once.
    neg_mask = mask_ref[...].astype(jnp.float32) * (jnp.float32(-1e9) * inv_scale)

    q = jnp.einsum("hqd,hdc->hqc", xq_b, wq_ref[...],
                   preferred_element_type=jnp.float32) + bq_ref[...]   # (H,TQ,dk)
    k = jnp.einsum("hsd,hdc->hsc", xkv_b, wk_ref[...],
                   preferred_element_type=jnp.float32) + bk_ref[...]   # (H,S,dk)
    v = jnp.einsum("hsd,hdc->hsc", xkv_b, wv_ref[...],
                   preferred_element_type=jnp.float32) + bv_ref[...]   # (H,S,dk)

    # Head-batched q k^T (contract dk); no explicit transpose of k.
    scores = jnp.einsum("hqc,hsc->hqs",
                        q.astype(jnp.bfloat16), k.astype(jnp.bfloat16),
                        preferred_element_type=jnp.float32)            # (H,TQ,S)
    logits = scores * inv_scale + neg_mask[None]
    logits = logits - jnp.max(logits, axis=-1, keepdims=True)
    e = jnp.exp(logits)
    # Exact reciprocal: the attention map is a user-visible output.
    sm = e / jnp.sum(e, axis=-1, keepdims=True)                        # (H,TQ,S)
    # Single lane-dense store of the whole (H, TQ, S) block.
    attn_ref[0] = sm.astype(attn_ref.dtype)

    ctx = jnp.einsum("hqs,hsc->hqc",
                     sm.astype(jnp.bfloat16), v.astype(jnp.bfloat16),
                     preferred_element_type=jnp.float32)               # (H,TQ,dk)
    # concat(heads) @ Wo  ==  sum_h ctx[h] @ Wo[h];  sum over the major axis H
    # is a cheap VALU reduction (no transpose, no lane-sparse scratch writes).
    mha = jnp.sum(
        jnp.einsum("hqc,hcd->hqd", ctx.astype(jnp.bfloat16), wo_ref[...],
                   preferred_element_type=jnp.float32),
        axis=0) + bo_ref[0]                                            # (TQ,D)

    # TODO(synk): nn.Dropout treated as identity (inference-mode semantics).
    y = _layernorm(x_q_f32 + mha, ln1_g_ref[0], ln1_b_ref[0])

    # TODO(synk): for very large dim_feedforward, tile the FFN over Fdim with a
    # VMEM accumulator instead of materializing h1 = (TQ, Fdim) at once.
    h1 = jnp.maximum(
        jnp.dot(y.astype(jnp.bfloat16), w1_ref[...],
                preferred_element_type=jnp.float32) + b1_ref[0], 0.0)
    ff = jnp.dot(h1.astype(jnp.bfloat16), w2_ref[...],
                 preferred_element_type=jnp.float32) + b2_ref[0]
    out_ref[0] = _layernorm(y + ff, ln2_g_ref[0], ln2_b_ref[0]).astype(out_ref.dtype)


def _choose_query_tile(s):
    """Largest convenient query tile that divides S (multiple of 8 if < S)."""
    if s <= 512:
        return s
    for t in (512, 256, 128, 64, 32, 16, 8):
        if s % t == 0:
            return t
    return s


def transformer_encoder_layer(x, params, mask=None, *, num_heads, dim_k,
                              attn_dtype=None):
    B, S, D = x.shape
    H, dk = num_heads, dim_k
    Fdim = params["w1"].shape[1]
    attn_dtype = x.dtype if attn_dtype is None else attn_dtype
    if mask is None:
        mask = jnp.zeros((S, S), dtype=jnp.float32)
    mask = mask.astype(jnp.float32)

    TQ = _choose_query_tile(S)
    NQ = S // TQ

    bf16, f32 = jnp.bfloat16, jnp.float32
    # Weights fed to the MXU in bf16 (halves DMA bytes + VMEM residency and
    # avoids multi-pass f32 MXU decomposition); biases / LN params stay f32.
    wq = params["wq"].astype(bf16)                         # (H, D, dk)
    wk = params["wk"].astype(bf16)
    wv = params["wv"].astype(bf16)
    bq = params["bq"].reshape(H, 1, dk).astype(f32)
    bk = params["bk"].reshape(H, 1, dk).astype(f32)
    bv = params["bv"].reshape(H, 1, dk).astype(f32)
    wo = params["wo"].reshape(H, dk, D).astype(bf16)       # (H, dk, D)
    bo = params["bo"].reshape(1, D).astype(f32)
    w1 = params["w1"].astype(bf16)
    b1 = params["b1"].reshape(1, Fdim).astype(f32)
    w2 = params["w2"].astype(bf16)
    b2 = params["b2"].reshape(1, D).astype(f32)
    ln1_g = params["ln1_g"].reshape(1, D).astype(f32)
    ln1_b = params["ln1_b"].reshape(1, D).astype(f32)
    ln2_g = params["ln2_g"].reshape(1, D).astype(f32)
    ln2_b = params["ln2_b"].reshape(1, D).astype(f32)

    # Advisory cost estimate for XLA scheduling around the custom call.
    flops_step = 2 * (H * (TQ * D * dk + 2 * S * D * dk + 2 * TQ * S * dk
                           + TQ * dk * D) + 2 * TQ * D * Fdim)
    weight_bytes_hbm = (2 * (3 * H * D * dk + H * dk * D + 2 * D * Fdim)
                        + 4 * (3 * H * dk + Fdim + 7 * D))
    cost = pl.CostEstimate(
        flops=B * NQ * flops_step,
        transcendentals=B * NQ * H * TQ * S,
        bytes_accessed=int(x.dtype.itemsize * B * S * D * (1 + NQ)      # x_q + x_kv
                           + 4 * B * NQ * TQ * S                        # mask
                           + weight_bytes_hbm
                           + x.dtype.itemsize * B * S * D               # out
                           + jnp.dtype(attn_dtype).itemsize * B * H * S * S))

    # VMEM budget from the real resident footprint, clamped to chip capacity
    # (v5e/v6e 128 MiB, v7x 64 MiB).
    itemsize = jnp.dtype(x.dtype).itemsize
    attn_isz = jnp.dtype(attn_dtype).itemsize
    weight_bytes = (2 * (3 * H * D * dk + H * dk * D + 2 * D * Fdim)
                    + 4 * (3 * H * dk + Fdim + 7 * D))
    block_bytes = (itemsize * (2 * TQ * D + S * D) + 4 * TQ * S
                   + attn_isz * H * TQ * S)
    interm_bytes = (4 * (3 * H * TQ * S + 2 * H * S * dk + 2 * H * TQ * dk
                         + TQ * Fdim + 6 * TQ * D)
                    + 2 * (H * (TQ + S) * D))
    budget = 2 * weight_bytes + 2 * block_bytes + interm_bytes + (8 << 20)
    try:
        cap = int(getattr(pltpu.get_tpu_info(), "vmem_capacity_bytes", 128 << 20))
    except Exception:
        cap = 128 << 20
    vmem_limit = int(min(max(budget, 16 << 20), int(0.9 * cap)))

    def _build_call(single_buffer_weights):
        def const_spec(shape):
            nd = len(shape)
            if single_buffer_weights:
                # Constant index_map across the grid -> single-buffer the weight.
                return pl.BlockSpec(shape, lambda b, qi: (0,) * nd,
                                    pipeline_mode=pl.Buffered(1))
            return pl.BlockSpec(shape, lambda b, qi: (0,) * nd)

        in_specs = [
            pl.BlockSpec((1, TQ, D), lambda b, qi: (b, qi, 0)),   # x (query tile)
            pl.BlockSpec((1, S, D), lambda b, qi: (b, 0, 0)),     # x (full, K/V)
            pl.BlockSpec((TQ, S), lambda b, qi: (qi, 0)),         # mask tile
            const_spec((H, D, dk)), const_spec((H, D, dk)), const_spec((H, D, dk)),
            const_spec((H, 1, dk)), const_spec((H, 1, dk)), const_spec((H, 1, dk)),
            const_spec((H, dk, D)), const_spec((1, D)),           # wo, bo
            const_spec((1, D)), const_spec((1, D)),               # ln1 g/b
            const_spec((D, Fdim)), const_spec((1, Fdim)),         # w1, b1
            const_spec((Fdim, D)), const_spec((1, D)),            # w2, b2
            const_spec((1, D)), const_spec((1, D)),               # ln2 g/b
        ]
        out_specs = [
            pl.BlockSpec((1, TQ, D), lambda b, qi: (b, qi, 0)),
            pl.BlockSpec((1, H, TQ, S), lambda b, qi: (b, 0, qi, 0)),
        ]
        kernel = functools.partial(encoder_layer_kernel, num_heads=H, dim_k=dk)
        # TODO(synk): the (B,H,S,S) attention map is always materialized because
        # the module returns it; add a no-attn entry point if unused downstream.
        return pl.pallas_call(
            kernel,
            out_shape=(jax.ShapeDtypeStruct((B, S, D), x.dtype),
                       jax.ShapeDtypeStruct((B, H, S, S), attn_dtype)),
            grid_spec=pltpu.PrefetchScalarGridSpec(
                num_scalar_prefetch=0,
                grid=(B, NQ),
                in_specs=in_specs,
                out_specs=out_specs),
            compiler_params=pltpu.CompilerParams(
                dimension_semantics=("parallel", "parallel"),
                vmem_limit_bytes=vmem_limit),
            cost_estimate=cost,
        )

    args = (x, x, mask, wq, wk, wv, bq, bk, bv, wo, bo,
            ln1_g, ln1_b, w1, b1, w2, b2, ln2_g, ln2_b)
    try:
        out, attn = _build_call(True)(*args)
    except Exception:
        # TODO(synk): pipeline_mode=pl.Buffered(1) not supported by this JAX
        # version; fall back to default double-buffered constant weights.
        out, attn = _build_call(False)(*args)
    return out, attn


def _init_params(key, dim_model, num_heads, dim_k, dim_ff):
    ks = jax.random.split(key, 12)
    n = lambda k, shape: (0.1 * jax.random.normal(k, shape)).astype(jnp.float32)
    return {
        "wq": n(ks[0], (num_heads, dim_model, dim_k)),
        "bq": n(ks[1], (num_heads, dim_k)),
        "wk": n(ks[2], (num_heads, dim_model, dim_k)),
        "bk": n(ks[3], (num_heads, dim_k)),
        "wv": n(ks[4], (num_heads, dim_model, dim_k)),
        "bv": n(ks[5], (num_heads, dim_k)),
        "wo": n(ks[6], (num_heads * dim_k, dim_model)),
        "bo": n(ks[7], (1, dim_model)),
        "ln1_g": jnp.ones((1, dim_model), jnp.float32),
        "ln1_b": jnp.zeros((1, dim_model), jnp.float32),
        "w1": n(ks[8], (dim_model, dim_ff)),
        "b1": n(ks[9], (1, dim_ff)),
        "w2": n(ks[10], (dim_ff, dim_model)),
        "b2": n(ks[11], (1, dim_model)),
        "ln2_g": jnp.ones((1, dim_model), jnp.float32),
        "ln2_b": jnp.zeros((1, dim_model), jnp.float32),
    }


def _reference(x, p, mask, num_heads, dim_k):
    # Pure-JAX f32 mirror of the PyTorch forward (dropout = identity).
    B, S, D = x.shape
    if mask is None:
        mask = jnp.zeros((S, S), x.dtype)
    outs, attns = [], []
    for h in range(num_heads):
        q = x @ p["wq"][h] + p["bq"][h]
        k = x @ p["wk"][h] + p["bk"][h]
        v = x @ p["wv"][h] + p["bv"][h]
        temp = jnp.einsum("bqd,bkd->bqk", q, k) + mask * (-1e9)
        sm = jax.nn.softmax(temp / (dim_k ** 0.5), axis=-1)
        attns.append(sm)
        outs.append(jnp.einsum("bqk,bkd->bqd", sm, v))
    mha = jnp.concatenate(outs, axis=-1) @ p["wo"] + p["bo"][0]
    y = _layernorm(x + mha, p["ln1_g"][0], p["ln1_b"][0])
    ff = jnp.maximum(y @ p["w1"] + p["b1"][0], 0.0) @ p["w2"] + p["b2"][0]
    out = _layernorm(y + ff, p["ln2_g"][0], p["ln2_b"][0])
    return out, jnp.stack(attns, axis=1)


if __name__ == "__main__":
    B, S, D = 2, 8, 32
    H = 4
    dim_k = max(D // H, 1)      # 8
    dim_ff = 64

    key = jax.random.PRNGKey(0)
    kx, kp = jax.random.split(key)
    x = jax.random.normal(kx, (B, S, D), dtype=jnp.float32)
    params = _init_params(kp, D, H, dim_k, dim_ff)

    out, attn = transformer_encoder_layer(x, params, mask=None,
                                          num_heads=H, dim_k=dim_k)
    out = jax.block_until_ready(out)
    attn = jax.block_until_ready(attn)

    ref_out, ref_attn = _reference(x, params, None, H, dim_k)
    # Kernel feeds bf16 into the MXU (f32 accumulation); compare against the
    # pure-f32 reference with a tolerance that absorbs bf16 input rounding.
    np.testing.assert_allclose(np.asarray(out), np.asarray(ref_out),
                               rtol=2e-2, atol=2e-2)
    np.testing.assert_allclose(np.asarray(attn), np.asarray(ref_attn),
                               rtol=2e-2, atol=2e-2)
    print("KERNEL_OK")
</pallas_src>

<mosaic_0001>
module attributes {stable_mosaic.version = 11 : i64} {
  func.func @encoder_layer_kernel(%arg0: i32, %arg1: i32, %arg2: memref<1x8x32xf32, #tpu.memory_space<vmem>>, %arg3: memref<1x8x32xf32, #tpu.memory_space<vmem>>, %arg4: memref<8x8xf32, #tpu.memory_space<vmem>>, %arg5: memref<4x32x8xbf16, #tpu.memory_space<vmem>>, %arg6: memref<4x32x8xbf16, #tpu.memory_space<vmem>>, %arg7: memref<4x32x8xbf16, #tpu.memory_space<vmem>>, %arg8: memref<4x1x8xf32, #tpu.memory_space<vmem>>, %arg9: memref<4x1x8xf32, #tpu.memory_space<vmem>>, %arg10: memref<4x1x8xf32, #tpu.memory_space<vmem>>, %arg11: memref<4x8x32xbf16, #tpu.memory_space<vmem>>, %arg12: memref<1x32xf32, #tpu.memory_space<vmem>>, %arg13: memref<1x32xf32, #tpu.memory_space<vmem>>, %arg14: memref<1x32xf32, #tpu.memory_space<vmem>>, %arg15: memref<32x64xbf16, #tpu.memory_space<vmem>>, %arg16: memref<1x64xf32, #tpu.memory_space<vmem>>, %arg17: memref<64x32xbf16, #tpu.memory_space<vmem>>, %arg18: memref<1x32xf32, #tpu.memory_space<vmem>>, %arg19: memref<1x32xf32, #tpu.memory_space<vmem>>, %arg20: memref<1x32xf32, #tpu.memory_space<vmem>>, %arg21: memref<1x8x32xf32, #tpu.memory_space<vmem>>, %arg22: memref<1x4x8x8xf32, #tpu.memory_space<vmem>>) attributes {dimension_semantics = [#tpu.dimension_semantics<parallel>, #tpu.dimension_semantics<parallel>], iteration_bounds = array<i64: 2, 1>, scalar_prefetch = 0 : i64, scratch_operands = 0 : i64, tpu.core_type = #tpu.core_type<tc>, window_params = [{transform_indices = @transform_0, window_bounds = array<i64: 1, 8, 32>}, {transform_indices = @transform_1, window_bounds = array<i64: 1, 8, 32>}, {transform_indices = @transform_2, window_bounds = array<i64: 8, 8>}, {pipeline_mode = #tpu.pipeline_mode<synchronous>, transform_indices = @transform_3, window_bounds = array<i64: 4, 32, 8>}, {pipeline_mode = #tpu.pipeline_mode<synchronous>, transform_indices = @transform_4, window_bounds = array<i64: 4, 32, 8>}, {pipeline_mode = #tpu.pipeline_mode<synchronous>, transform_indices = @transform_5, window_bounds = array<i64: 4, 32, 8>}, {pipeline_mode = #tpu.pipeline_mode<synchronous>, transform_indices = @transform_6, window_bounds = array<i64: 4, 1, 8>}, {pipeline_mode = #tpu.pipeline_mode<synchronous>, transform_indices = @transform_7, window_bounds = array<i64: 4, 1, 8>}, {pipeline_mode = #tpu.pipeline_mode<synchronous>, transform_indices = @transform_8, window_bounds = array<i64: 4, 1, 8>}, {pipeline_mode = #tpu.pipeline_mode<synchronous>, transform_indices = @transform_9, window_bounds = array<i64: 4, 8, 32>}, {pipeline_mode = #tpu.pipeline_mode<synchronous>, transform_indices = @transform_10, window_bounds = array<i64: 1, 32>}, {pipeline_mode = #tpu.pipeline_mode<synchronous>, transform_indices = @transform_11, window_bounds = array<i64: 1, 32>}, {pipeline_mode = #tpu.pipeline_mode<synchronous>, transform_indices = @transform_12, window_bounds = array<i64: 1, 32>}, {pipeline_mode = #tpu.pipeline_mode<synchronous>, transform_indices = @transform_13, window_bounds = array<i64: 32, 64>}, {pipeline_mode = #tpu.pipeline_mode<synchronous>, transform_indices = @transform_14, window_bounds = array<i64: 1, 64>}, {pipeline_mode = #tpu.pipeline_mode<synchronous>, transform_indices = @transform_15, window_bounds = array<i64: 64, 32>}, {pipeline_mode = #tpu.pipeline_mode<synchronous>, transform_indices = @transform_16, window_bounds = array<i64: 1, 32>}, {pipeline_mode = #tpu.pipeline_mode<synchronous>, transform_indices = @transform_17, window_bounds = array<i64: 1, 32>}, {pipeline_mode = #tpu.pipeline_mode<synchronous>, transform_indices = @transform_18, window_bounds = array<i64: 1, 32>}, {transform_indices = @transform_19, window_bounds = array<i64: 1, 8, 32>}, {transform_indices = @transform_20, window_bounds = array<i64: 1, 4, 8, 8>}]} {
    %c0 = arith.constant 0 : index
    %c0_0 = arith.constant 0 : index
    %c0_1 = arith.constant 0 : index
    %0 = vector.load %arg2[%c0, %c0_0, %c0_1] : memref<1x8x32xf32, #tpu.memory_space<vmem>>, vector<1x8x32xf32>
    %1 = vector.shape_cast %0 : vector<1x8x32xf32> to vector<8x32xf32>
    %c0_2 = arith.constant 0 : index
    %c0_3 = arith.constant 0 : index
    %c0_4 = arith.constant 0 : index
    %2 = vector.load %arg2[%c0_2, %c0_3, %c0_4] : memref<1x8x32xf32, #tpu.memory_space<vmem>>, vector<1x8x32xf32>
    %3 = vector.shape_cast %2 : vector<1x8x32xf32> to vector<8x32xf32>
    %4 = arith.truncf %3 : vector<8x32xf32> to vector<8x32xbf16>
    %5 = vector.shape_cast %4 : vector<8x32xbf16> to vector<1x8x32xbf16>
    %6 = vector.shape_cast %5 : vector<1x8x32xbf16> to vector<1x8x32xbf16>
    %7 = vector.broadcast %6 : vector<1x8x32xbf16> to vector<4x8x32xbf16>
    %c0_5 = arith.constant 0 : index
    %c0_6 = arith.constant 0 : index
    %c0_7 = arith.constant 0 : index
    %8 = vector.load %arg3[%c0_5, %c0_6, %c0_7] : memref<1x8x32xf32, #tpu.memory_space<vmem>>, vector<1x8x32xf32>
    %9 = vector.shape_cast %8 : vector<1x8x32xf32> to vector<8x32xf32>
    %10 = arith.truncf %9 : vector<8x32xf32> to vector<8x32xbf16>
    %11 = vector.shape_cast %10 : vector<8x32xbf16> to vector<1x8x32xbf16>
    %12 = vector.shape_cast %11 : vector<1x8x32xbf16> to vector<1x8x32xbf16>
    %13 = vector.broadcast %12 : vector<1x8x32xbf16> to vector<4x8x32xbf16>
    %c0_8 = arith.constant 0 : index
    %c0_9 = arith.constant 0 : index
    %14 = vector.load %arg4[%c0_8, %c0_9] : memref<8x8xf32, #tpu.memory_space<vmem>>, vector<8x8xf32>
    %cst = arith.constant -1.000000e+09 : f32
    %cst_10 = arith.constant 0.353553385 : f32
    %15 = arith.mulf %cst, %cst_10 : f32
    %16 = vector.broadcast %15 : f32 to vector<8x8xf32>
    %17 = arith.mulf %14, %16 : vector<8x8xf32>
    %c0_11 = arith.constant 0 : index
    %c0_12 = arith.constant 0 : index
    %c0_13 = arith.constant 0 : index
    %18 = vector.load %arg5[%c0_11, %c0_12, %c0_13] : memref<4x32x8xbf16, #tpu.memory_space<vmem>>, vector<4x32x8xbf16>
    "tpu.trace_start"() <{level = 10 : i32, message = "hqd,hdc->hqc"}> : () -> ()
    %cst_14 = arith.constant dense<0.000000e+00> : vector<4x8x8xf32>
    %19 = tpu.matmul %7, %18, %cst_14 {dimension_numbers = #tpu.dot_dimension_numbers<[2], [1], [1], [2], [0, 0, 0, 1, 1, 2], [0], [0]>} : vector<4x8x32xbf16>, vector<4x32x8xbf16>, vector<4x8x8xf32> -> vector<4x8x8xf32>
    "tpu.trace_stop"() : () -> ()
    %c0_15 = arith.constant 0 : index
    %c0_16 = arith.constant 0 : index
    %c0_17 = arith.constant 0 : index
    %20 = vector.load %arg8[%c0_15, %c0_16, %c0_17] : memref<4x1x8xf32, #tpu.memory_space<vmem>>, vector<4x1x8xf32>
    %21 = vector.broadcast %20 : vector<4x1x8xf32> to vector<4x8x8xf32>
    %22 = arith.addf %19, %21 : vector<4x8x8xf32>
    %c0_18 = arith.constant 0 : index
    %c0_19 = arith.constant 0 : index
    %c0_20 = arith.constant 0 : index
    %23 = vector.load %arg6[%c0_18, %c0_19, %c0_20] : memref<4x32x8xbf16, #tpu.memory_space<vmem>>, vector<4x32x8xbf16>
    "tpu.trace_start"() <{level = 10 : i32, message = "hsd,hdc->hsc"}> : () -> ()
    %cst_21 = arith.constant dense<0.000000e+00> : vector<4x8x8xf32>
    %24 = tpu.matmul %13, %23, %cst_21 {dimension_numbers = #tpu.dot_dimension_numbers<[2], [1], [1], [2], [0, 0, 0, 1, 1, 2], [0], [0]>} : vector<4x8x32xbf16>, vector<4x32x8xbf16>, vector<4x8x8xf32> -> vector<4x8x8xf32>
    "tpu.trace_stop"() : () -> ()
    %c0_22 = arith.constant 0 : index
    %c0_23 = arith.constant 0 : index
    %c0_24 = arith.constant 0 : index
    %25 = vector.load %arg9[%c0_22, %c0_23, %c0_24] : memref<4x1x8xf32, #tpu.memory_space<vmem>>, vector<4x1x8xf32>
    %26 = vector.broadcast %25 : vector<4x1x8xf32> to vector<4x8x8xf32>
    %27 = arith.addf %24, %26 : vector<4x8x8xf32>
    %c0_25 = arith.constant 0 : index
    %c0_26 = arith.constant 0 : index
    %c0_27 = arith.constant 0 : index
    %28 = vector.load %arg7[%c0_25, %c0_26, %c0_27] : memref<4x32x8xbf16, #tpu.memory_space<vmem>>, vector<4x32x8xbf16>
    "tpu.trace_start"() <{level = 10 : i32, message = "hsd,hdc->hsc"}> : () -> ()
    %cst_28 = arith.constant dense<0.000000e+00> : vector<4x8x8xf32>
    %29 = tpu.matmul %13, %28, %cst_28 {dimension_numbers = #tpu.dot_dimension_numbers<[2], [1], [1], [2], [0, 0, 0, 1, 1, 2], [0], [0]>} : vector<4x8x32xbf16>, vector<4x32x8xbf16>, vector<4x8x8xf32> -> vector<4x8x8xf32>
    "tpu.trace_stop"() : () -> ()
    %c0_29 = arith.constant 0 : index
    %c0_30 = arith.constant 0 : index
    %c0_31 = arith.constant 0 : index
    %30 = vector.load %arg10[%c0_29, %c0_30, %c0_31] : memref<4x1x8xf32, #tpu.memory_space<vmem>>, vector<4x1x8xf32>
    %31 = vector.broadcast %30 : vector<4x1x8xf32> to vector<4x8x8xf32>
    %32 = arith.addf %29, %31 : vector<4x8x8xf32>
    %33 = arith.truncf %22 : vector<4x8x8xf32> to vector<4x8x8xbf16>
    %34 = arith.truncf %27 : vector<4x8x8xf32> to vector<4x8x8xbf16>
    "tpu.trace_start"() <{level = 10 : i32, message = "hqc,hsc->hqs"}> : () -> ()
    %cst_32 = arith.constant dense<0.000000e+00> : vector<4x8x8xf32>
    %35 = tpu.matmul %33, %34, %cst_32 {dimension_numbers = #tpu.dot_dimension_numbers<[2], [2], [1], [1], [0, 0, 0, 1, 1, 1], [0], [0]>} : vector<4x8x8xbf16>, vector<4x8x8xbf16>, vector<4x8x8xf32> -> vector<4x8x8xf32>
    "tpu.trace_stop"() : () -> ()
    %cst_33 = arith.constant 0.353553385 : f32
    %36 = vector.broadcast %cst_33 : f32 to vector<4x8x8xf32>
    %37 = arith.mulf %35, %36 : vector<4x8x8xf32>
    %38 = vector.shape_cast %17 : vector<8x8xf32> to vector<1x8x8xf32>
    %39 = vector.broadcast %38 : vector<1x8x8xf32> to vector<4x8x8xf32>
    %40 = arith.addf %37, %39 : vector<4x8x8xf32>
    %cst_34 = arith.constant dense<0xFF800000> : vector<4x8xf32>
    %41 = vector.multi_reduction <maximumf>, %40, %cst_34 [2] : vector<4x8x8xf32> to vector<4x8xf32>
    %42 = vector.shape_cast %41 : vector<4x8xf32> to vector<4x8x1xf32>
    %43 = vector.broadcast %42 : vector<4x8x1xf32> to vector<4x8x8xf32>
    %44 = arith.subf %40, %43 : vector<4x8x8xf32>
    %45 = math.exp %44 : vector<4x8x8xf32>
    %cst_35 = arith.constant dense<0.000000e+00> : vector<4x8xf32>
    %46 = vector.multi_reduction <add>, %45, %cst_35 [2] : vector<4x8x8xf32> to vector<4x8xf32>
    %47 = vector.shape_cast %46 : vector<4x8xf32> to vector<4x8x1xf32>
    %48 = vector.broadcast %47 : vector<4x8x1xf32> to vector<4x8x8xf32>
    %49 = arith.divf %45, %48 : vector<4x8x8xf32>
    %c0_36 = arith.constant 0 : index
    %c0_37 = arith.constant 0 : index
    %c0_38 = arith.constant 0 : index
    %c0_39 = arith.constant 0 : index
    %50 = vector.load %arg22[%c0_36, %c0_37, %c0_38, %c0_39] : memref<1x4x8x8xf32, #tpu.memory_space<vmem>>, vector<1x4x8x8xf32>
    %51 = vector.shape_cast %50 : vector<1x4x8x8xf32> to vector<4x8x8xf32>
    %52 = vector.shape_cast %49 : vector<4x8x8xf32> to vector<1x4x8x8xf32>
    tpu.vector_store %arg22[%c0_36, %c0_37, %c0_38, %c0_39], %52 {strides = array<i32>} : memref<1x4x8x8xf32, #tpu.memory_space<vmem>>, vector<1x4x8x8xf32>,
    %53 = arith.truncf %49 : vector<4x8x8xf32> to vector<4x8x8xbf16>
    %54 = arith.truncf %32 : vector<4x8x8xf32> to vector<4x8x8xbf16>
    "tpu.trace_start"() <{level = 10 : i32, message = "hqs,hsc->hqc"}> : () -> ()
    %cst_40 = arith.constant dense<0.000000e+00> : vector<4x8x8xf32>
    %55 = tpu.matmul %53, %54, %cst_40 {dimension_numbers = #tpu.dot_dimension_numbers<[2], [1], [1], [2], [0, 0, 0, 1, 1, 2], [0], [0]>} : vector<4x8x8xbf16>, vector<4x8x8xbf16>, vector<4x8x8xf32> -> vector<4x8x8xf32>
    "tpu.trace_stop"() : () -> ()
    %56 = arith.truncf %55 : vector<4x8x8xf32> to vector<4x8x8xbf16>
    %c0_41 = arith.constant 0 : index
    %c0_42 = arith.constant 0 : index
    %c0_43 = arith.constant 0 : index
    %57 = vector.load %arg11[%c0_41, %c0_42, %c0_43] : memref<4x8x32xbf16, #tpu.memory_space<vmem>>, vector<4x8x32xbf16>
    "tpu.trace_start"() <{level = 10 : i32, message = "hqc,hcd->hqd"}> : () -> ()
    %cst_44 = arith.constant dense<0.000000e+00> : vector<4x8x32xf32>
    %58 = tpu.matmul %56, %57, %cst_44 {dimension_numbers = #tpu.dot_dimension_numbers<[2], [1], [1], [2], [0, 0, 0, 1, 1, 2], [0], [0]>} : vector<4x8x8xbf16>, vector<4x8x32xbf16>, vector<4x8x32xf32> -> vector<4x8x32xf32>
    "tpu.trace_stop"() : () -> ()
    %cst_45 = arith.constant dense<0.000000e+00> : vector<8x32xf32>
    %59 = vector.multi_reduction <add>, %58, %cst_45 [0] : vector<4x8x32xf32> to vector<8x32xf32>
    %c0_46 = arith.constant 0 : index
    %c0_47 = arith.constant 0 : index
    %60 = vector.load %arg12[%c0_46, %c0_47] : memref<1x32xf32, #tpu.memory_space<vmem>>, vector<1x32xf32>
    %61 = vector.shape_cast %60 : vector<1x32xf32> to vector<32xf32>
    %62 = vector.shape_cast %61 : vector<32xf32> to vector<1x32xf32>
    %63 = vector.broadcast %62 : vector<1x32xf32> to vector<8x32xf32>
    %64 = arith.addf %59, %63 : vector<8x32xf32>
    %65 = arith.addf %1, %64 : vector<8x32xf32>
    %c0_48 = arith.constant 0 : index
    %c0_49 = arith.constant 0 : index
    %66 = vector.load %arg13[%c0_48, %c0_49] : memref<1x32xf32, #tpu.memory_space<vmem>>, vector<1x32xf32>
    %67 = vector.shape_cast %66 : vector<1x32xf32> to vector<32xf32>
    %c0_50 = arith.constant 0 : index
    %c0_51 = arith.constant 0 : index
    %68 = vector.load %arg14[%c0_50, %c0_51] : memref<1x32xf32, #tpu.memory_space<vmem>>, vector<1x32xf32>
    %69 = vector.shape_cast %68 : vector<1x32xf32> to vector<32xf32>
    %cst_52 = arith.constant dense<0.000000e+00> : vector<8xf32>
    %70 = vector.multi_reduction <add>, %65, %cst_52 [1] : vector<8x32xf32> to vector<8xf32>
    %71 = vector.shape_cast %70 : vector<8xf32> to vector<8x1xf32>
    %cst_53 = arith.constant 3.200000e+01 : f32
    %72 = vector.broadcast %cst_53 : f32 to vector<8x1xf32>
    %73 = arith.divf %71, %72 : vector<8x1xf32>
    %74 = vector.broadcast %73 : vector<8x1xf32> to vector<8x32xf32>
    %75 = arith.subf %65, %74 : vector<8x32xf32>
    %76 = arith.mulf %75, %75 : vector<8x32xf32>
    %cst_54 = arith.constant dense<0.000000e+00> : vector<8xf32>
    %77 = vector.multi_reduction <add>, %76, %cst_54 [1] : vector<8x32xf32> to vector<8xf32>
    %78 = vector.shape_cast %77 : vector<8xf32> to vector<8x1xf32>
    %cst_55 = arith.constant 3.200000e+01 : f32
    %79 = vector.broadcast %cst_55 : f32 to vector<8x1xf32>
    %80 = arith.divf %78, %79 : vector<8x1xf32>
    %81 = vector.broadcast %73 : vector<8x1xf32> to vector<8x32xf32>
    %82 = arith.subf %65, %81 : vector<8x32xf32>
    %cst_56 = arith.constant 9.99999974E-6 : f32
    %83 = vector.broadcast %cst_56 : f32 to vector<8x1xf32>
    %84 = arith.addf %80, %83 : vector<8x1xf32>
    %85 = math.rsqrt %84 : vector<8x1xf32>
    %86 = vector.broadcast %85 : vector<8x1xf32> to vector<8x32xf32>
    %87 = arith.mulf %82, %86 : vector<8x32xf32>
    %88 = vector.shape_cast %67 : vector<32xf32> to vector<1x32xf32>
    %89 = vector.broadcast %88 : vector<1x32xf32> to vector<8x32xf32>
    %90 = arith.mulf %87, %89 : vector<8x32xf32>
    %91 = vector.shape_cast %69 : vector<32xf32> to vector<1x32xf32>
    %92 = vector.broadcast %91 : vector<1x32xf32> to vector<8x32xf32>
    %93 = arith.addf %90, %92 : vector<8x32xf32>
    %94 = arith.truncf %93 : vector<8x32xf32> to vector<8x32xbf16>
    %c0_57 = arith.constant 0 : index
    %c0_58 = arith.constant 0 : index
    %95 = vector.load %arg15[%c0_57, %c0_58] : memref<32x64xbf16, #tpu.memory_space<vmem>>, vector<32x64xbf16>
    %cst_59 = arith.constant dense<0.000000e+00> : vector<8x64xf32>
    %96 = tpu.matmul %94, %95, %cst_59 {dimension_numbers = #tpu.dot_dimension_numbers<[1], [0], [0], [1], [0, 0, 1, 1], [], []>} : vector<8x32xbf16>, vector<32x64xbf16>, vector<8x64xf32> -> vector<8x64xf32>
    %c0_60 = arith.constant 0 : index
    %c0_61 = arith.constant 0 : index
    %97 = vector.load %arg16[%c0_60, %c0_61] : memref<1x64xf32, #tpu.memory_space<vmem>>, vector<1x64xf32>
    %98 = vector.shape_cast %97 : vector<1x64xf32> to vector<64xf32>
    %99 = vector.shape_cast %98 : vector<64xf32> to vector<1x64xf32>
    %100 = vector.broadcast %99 : vector<1x64xf32> to vector<8x64xf32>
    %101 = arith.addf %96, %100 : vector<8x64xf32>
    %cst_62 = arith.constant 0.000000e+00 : f32
    %102 = vector.broadcast %cst_62 : f32 to vector<8x64xf32>
    %103 = arith.maximumf %101, %102 : vector<8x64xf32>
    %104 = arith.truncf %103 : vector<8x64xf32> to vector<8x64xbf16>
    %c0_63 = arith.constant 0 : index
    %c0_64 = arith.constant 0 : index
    %105 = vector.load %arg17[%c0_63, %c0_64] : memref<64x32xbf16, #tpu.memory_space<vmem>>, vector<64x32xbf16>
    %cst_65 = arith.constant dense<0.000000e+00> : vector<8x32xf32>
    %106 = tpu.matmul %104, %105, %cst_65 {dimension_numbers = #tpu.dot_dimension_numbers<[1], [0], [0], [1], [0, 0, 1, 1], [], []>} : vector<8x64xbf16>, vector<64x32xbf16>, vector<8x32xf32> -> vector<8x32xf32>
    %c0_66 = arith.constant 0 : index
    %c0_67 = arith.constant 0 : index
    %107 = vector.load %arg18[%c0_66, %c0_67] : memref<1x32xf32, #tpu.memory_space<vmem>>, vector<1x32xf32>
    %108 = vector.shape_cast %107 : vector<1x32xf32> to vector<32xf32>
    %109 = vector.shape_cast %108 : vector<32xf32> to vector<1x32xf32>
    %110 = vector.broadcast %109 : vector<1x32xf32> to vector<8x32xf32>
    %111 = arith.addf %106, %110 : vector<8x32xf32>
    %112 = arith.addf %93, %111 : vector<8x32xf32>
    %c0_68 = arith.constant 0 : index
    %c0_69 = arith.constant 0 : index
    %113 = vector.load %arg19[%c0_68, %c0_69] : memref<1x32xf32, #tpu.memory_space<vmem>>, vector<1x32xf32>
    %114 = vector.shape_cast %113 : vector<1x32xf32> to vector<32xf32>
    %c0_70 = arith.constant 0 : index
    %c0_71 = arith.constant 0 : index
    %115 = vector.load %arg20[%c0_70, %c0_71] : memref<1x32xf32, #tpu.memory_space<vmem>>, vector<1x32xf32>
    %116 = vector.shape_cast %115 : vector<1x32xf32> to vector<32xf32>
    %cst_72 = arith.constant dense<0.000000e+00> : vector<8xf32>
    %117 = vector.multi_reduction <add>, %112, %cst_72 [1] : vector<8x32xf32> to vector<8xf32>
    %118 = vector.shape_cast %117 : vector<8xf32> to vector<8x1xf32>
    %cst_73 = arith.constant 3.200000e+01 : f32
    %119 = vector.broadcast %cst_73 : f32 to vector<8x1xf32>
    %120 = arith.divf %118, %119 : vector<8x1xf32>
    %121 = vector.broadcast %120 : vector<8x1xf32> to vector<8x32xf32>
    %122 = arith.subf %112, %121 : vector<8x32xf32>
    %123 = arith.mulf %122, %122 : vector<8x32xf32>
    %cst_74 = arith.constant dense<0.000000e+00> : vector<8xf32>
    %124 = vector.multi_reduction <add>, %123, %cst_74 [1] : vector<8x32xf32> to vector<8xf32>
    %125 = vector.shape_cast %124 : vector<8xf32> to vector<8x1xf32>
    %cst_75 = arith.constant 3.200000e+01 : f32
    %126 = vector.broadcast %cst_75 : f32 to vector<8x1xf32>
    %127 = arith.divf %125, %126 : vector<8x1xf32>
    %128 = vector.broadcast %120 : vector<8x1xf32> to vector<8x32xf32>
    %129 = arith.subf %112, %128 : vector<8x32xf32>
    %cst_76 = arith.constant 9.99999974E-6 : f32
    %130 = vector.broadcast %cst_76 : f32 to vector<8x1xf32>
    %131 = arith.addf %127, %130 : vector<8x1xf32>
    %132 = math.rsqrt %131 : vector<8x1xf32>
    %133 = vector.broadcast %132 : vector<8x1xf32> to vector<8x32xf32>
    %134 = arith.mulf %129, %133 : vector<8x32xf32>
    %135 = vector.shape_cast %114 : vector<32xf32> to vector<1x32xf32>
    %136 = vector.broadcast %135 : vector<1x32xf32> to vector<8x32xf32>
    %137 = arith.mulf %134, %136 : vector<8x32xf32>
    %138 = vector.shape_cast %116 : vector<32xf32> to vector<1x32xf32>
    %139 = vector.broadcast %138 : vector<1x32xf32> to vector<8x32xf32>
    %140 = arith.addf %137, %139 : vector<8x32xf32>
    %c0_77 = arith.constant 0 : index
    %c0_78 = arith.constant 0 : index
    %c0_79 = arith.constant 0 : index
    %141 = vector.load %arg21[%c0_77, %c0_78, %c0_79] : memref<1x8x32xf32, #tpu.memory_space<vmem>>, vector<1x8x32xf32>
    %142 = vector.shape_cast %141 : vector<1x8x32xf32> to vector<8x32xf32>
    %143 = vector.shape_cast %140 : vector<8x32xf32> to vector<1x8x32xf32>
    tpu.vector_store %arg21[%c0_77, %c0_78, %c0_79], %143 {strides = array<i32>} : memref<1x8x32xf32, #tpu.memory_space<vmem>>, vector<1x8x32xf32>,
    return
  }
  func.func @transform_0(%arg0: i32, %arg1: i32) -> (i32, i32, i32) {
    %c0_i32 = arith.constant 0 : i32
    %c0_i32_0 = arith.constant 0 : i32
    return %arg0, %arg1, %c0_i32 : i32, i32, i32
  }
  func.func @transform_1(%arg0: i32, %arg1: i32) -> (i32, i32, i32) {
    %c0_i32 = arith.constant 0 : i32
    %c0_i32_0 = arith.constant 0 : i32
    %c0_i32_1 = arith.constant 0 : i32
    return %arg0, %c0_i32, %c0_i32_0 : i32, i32, i32
  }
  func.func @transform_2(%arg0: i32, %arg1: i32) -> (i32, i32) {
    %c0_i32 = arith.constant 0 : i32
    %c0_i32_0 = arith.constant 0 : i32
    return %arg1, %c0_i32 : i32, i32
  }
  func.func @transform_3(%arg0: i32, %arg1: i32) -> (i32, i32, i32) {
    %c0_i32 = arith.constant 0 : i32
    %c0_i32_0 = arith.constant 0 : i32
    %c0_i32_1 = arith.constant 0 : i32
    %c0_i32_2 = arith.constant 0 : i32
    return %c0_i32, %c0_i32_0, %c0_i32_1 : i32, i32, i32
  }
  func.func @transform_4(%arg0: i32, %arg1: i32) -> (i32, i32, i32) {
    %c0_i32 = arith.constant 0 : i32
    %c0_i32_0 = arith.constant 0 : i32
    %c0_i32_1 = arith.constant 0 : i32
    %c0_i32_2 = arith.constant 0 : i32
    return %c0_i32, %c0_i32_0, %c0_i32_1 : i32, i32, i32
  }
  func.func @transform_5(%arg0: i32, %arg1: i32) -> (i32, i32, i32) {
    %c0_i32 = arith.constant 0 : i32
    %c0_i32_0 = arith.constant 0 : i32
    %c0_i32_1 = arith.constant 0 : i32
    %c0_i32_2 = arith.constant 0 : i32
    return %c0_i32, %c0_i32_0, %c0_i32_1 : i32, i32, i32
  }
  func.func @transform_6(%arg0: i32, %arg1: i32) -> (i32, i32, i32) {
    %c0_i32 = arith.constant 0 : i32
    %c0_i32_0 = arith.constant 0 : i32
    %c0_i32_1 = arith.constant 0 : i32
    %c0_i32_2 = arith.constant 0 : i32
    return %c0_i32, %c0_i32_0, %c0_i32_1 : i32, i32, i32
  }
  func.func @transform_7(%arg0: i32, %arg1: i32) -> (i32, i32, i32) {
    %c0_i32 = arith.constant 0 : i32
    %c0_i32_0 = arith.constant 0 : i32
    %c0_i32_1 = arith.constant 0 : i32
    %c0_i32_2 = arith.constant 0 : i32
    return %c0_i32, %c0_i32_0, %c0_i32_1 : i32, i32, i32
  }
  func.func @transform_8(%arg0: i32, %arg1: i32) -> (i32, i32, i32) {
    %c0_i32 = arith.constant 0 : i32
    %c0_i32_0 = arith.constant 0 : i32
    %c0_i32_1 = arith.constant 0 : i32
    %c0_i32_2 = arith.constant 0 : i32
    return %c0_i32, %c0_i32_0, %c0_i32_1 : i32, i32, i32
  }
  func.func @transform_9(%arg0: i32, %arg1: i32) -> (i32, i32, i32) {
    %c0_i32 = arith.constant 0 : i32
    %c0_i32_0 = arith.constant 0 : i32
    %c0_i32_1 = arith.constant 0 : i32
    %c0_i32_2 = arith.constant 0 : i32
    return %c0_i32, %c0_i32_0, %c0_i32_1 : i32, i32, i32
  }
  func.func @transform_10(%arg0: i32, %arg1: i32) -> (i32, i32) {
    %c0_i32 = arith.constant 0 : i32
    %c0_i32_0 = arith.constant 0 : i32
    %c0_i32_1 = arith.constant 0 : i32
    return %c0_i32, %c0_i32_0 : i32, i32
  }
  func.func @transform_11(%arg0: i32, %arg1: i32) -> (i32, i32) {
    %c0_i32 = arith.constant 0 : i32
    %c0_i32_0 = arith.constant 0 : i32
    %c0_i32_1 = arith.constant 0 : i32
    return %c0_i32, %c0_i32_0 : i32, i32
  }
  func.func @transform_12(%arg0: i32, %arg1: i32) -> (i32, i32) {
    %c0_i32 = arith.constant 0 : i32
    %c0_i32_0 = arith.constant 0 : i32
    %c0_i32_1 = arith.constant 0 : i32
    return %c0_i32, %c0_i32_0 : i32, i32
  }
  func.func @transform_13(%arg0: i32, %arg1: i32) -> (i32, i32) {
    %c0_i32 = arith.constant 0 : i32
    %c0_i32_0 = arith.constant 0 : i32
    %c0_i32_1 = arith.constant 0 : i32
    return %c0_i32, %c0_i32_0 : i32, i32
  }
  func.func @transform_14(%arg0: i32, %arg1: i32) -> (i32, i32) {
    %c0_i32 = arith.constant 0 : i32
    %c0_i32_0 = arith.constant 0 : i32
    %c0_i32_1 = arith.constant 0 : i32
    return %c0_i32, %c0_i32_0 : i32, i32
  }
  func.func @transform_15(%arg0: i32, %arg1: i32) -> (i32, i32) {
    %c0_i32 = arith.constant 0 : i32
    %c0_i32_0 = arith.constant 0 : i32
    %c0_i32_1 = arith.constant 0 : i32
    return %c0_i32, %c0_i32_0 : i32, i32
  }
  func.func @transform_16(%arg0: i32, %arg1: i32) -> (i32, i32) {
    %c0_i32 = arith.constant 0 : i32
    %c0_i32_0 = arith.constant 0 : i32
    %c0_i32_1 = arith.constant 0 : i32
    return %c0_i32, %c0_i32_0 : i32, i32
  }
  func.func @transform_17(%arg0: i32, %arg1: i32) -> (i32, i32) {
    %c0_i32 = arith.constant 0 : i32
    %c0_i32_0 = arith.constant 0 : i32
    %c0_i32_1 = arith.constant 0 : i32
    return %c0_i32, %c0_i32_0 : i32, i32
  }
  func.func @transform_18(%arg0: i32, %arg1: i32) -> (i32, i32) {
    %c0_i32 = arith.constant 0 : i32
    %c0_i32_0 = arith.constant 0 : i32
    %c0_i32_1 = arith.constant 0 : i32
    return %c0_i32, %c0_i32_0 : i32, i32
  }
  func.func @transform_19(%arg0: i32, %arg1: i32) -> (i32, i32, i32) {
    %c0_i32 = arith.constant 0 : i32
    %c0_i32_0 = arith.constant 0 : i32
    return %arg0, %arg1, %c0_i32 : i32, i32, i32
  }
  func.func @transform_20(%arg0: i32, %arg1: i32) -> (i32, i32, i32, i32) {
    %c0_i32 = arith.constant 0 : i32
    %c0_i32_0 = arith.constant 0 : i32
    %c0_i32_1 = arith.constant 0 : i32
    return %arg0, %c0_i32, %arg1, %c0_i32_0 : i32, i32, i32, i32
  }
}

module attributes {stable_mosaic.version = 11 : i64} {
  func.func @encoder_layer_kernel(%arg0: i32, %arg1: i32, %arg2: memref<1x8x32xf32, #tpu.memory_space<vmem>>, %arg3: memref<1x8x32xf32, #tpu.memory_space<vmem>>, %arg4: memref<8x8xf32, #tpu.memory_space<vmem>>, %arg5: memref<4x32x8xbf16, #tpu.memory_space<vmem>>, %arg6: memref<4x32x8xbf16, #tpu.memory_space<vmem>>, %arg7: memref<4x32x8xbf16, #tpu.memory_space<vmem>>, %arg8: memref<4x1x8xf32, #tpu.memory_space<vmem>>, %arg9: memref<4x1x8xf32, #tpu.memory_space<vmem>>, %arg10: memref<4x1x8xf32, #tpu.memory_space<vmem>>, %arg11: memref<4x8x32xbf16, #tpu.memory_space<vmem>>, %arg12: memref<1x32xf32, #tpu.memory_space<vmem>>, %arg13: memref<1x32xf32, #tpu.memory_space<vmem>>, %arg14: memref<1x32xf32, #tpu.memory_space<vmem>>, %arg15: memref<32x64xbf16, #tpu.memory_space<vmem>>, %arg16: memref<1x64xf32, #tpu.memory_space<vmem>>, %arg17: memref<64x32xbf16, #tpu.memory_space<vmem>>, %arg18: memref<1x32xf32, #tpu.memory_space<vmem>>, %arg19: memref<1x32xf32, #tpu.memory_space<vmem>>, %arg20: memref<1x32xf32, #tpu.memory_space<vmem>>, %arg21: memref<1x8x32xf32, #tpu.memory_space<vmem>>, %arg22: memref<1x4x8x8xf32, #tpu.memory_space<vmem>>) attributes {dimension_semantics = [#tpu.dimension_semantics<parallel>, #tpu.dimension_semantics<parallel>], iteration_bounds = array<i64: 2, 1>, scalar_prefetch = 0 : i64, scratch_operands = 0 : i64, tpu.core_type = #tpu.core_type<tc>, window_params = [{transform_indices = @transform_0, window_bounds = array<i64: 1, 8, 32>}, {transform_indices = @transform_1, window_bounds = array<i64: 1, 8, 32>}, {transform_indices = @transform_2, window_bounds = array<i64: 8, 8>}, {pipeline_mode = #tpu.pipeline_mode<synchronous>, transform_indices = @transform_3, window_bounds = array<i64: 4, 32, 8>}, {pipeline_mode = #tpu.pipeline_mode<synchronous>, transform_indices = @transform_4, window_bounds = array<i64: 4, 32, 8>}, {pipeline_mode = #tpu.pipeline_mode<synchronous>, transform_indices = @transform_5, window_bounds = array<i64: 4, 32, 8>}, {pipeline_mode = #tpu.pipeline_mode<synchronous>, transform_indices = @transform_6, window_bounds = array<i64: 4, 1, 8>}, {pipeline_mode = #tpu.pipeline_mode<synchronous>, transform_indices = @transform_7, window_bounds = array<i64: 4, 1, 8>}, {pipeline_mode = #tpu.pipeline_mode<synchronous>, transform_indices = @transform_8, window_bounds = array<i64: 4, 1, 8>}, {pipeline_mode = #tpu.pipeline_mode<synchronous>, transform_indices = @transform_9, window_bounds = array<i64: 4, 8, 32>}, {pipeline_mode = #tpu.pipeline_mode<synchronous>, transform_indices = @transform_10, window_bounds = array<i64: 1, 32>}, {pipeline_mode = #tpu.pipeline_mode<synchronous>, transform_indices = @transform_11, window_bounds = array<i64: 1, 32>}, {pipeline_mode = #tpu.pipeline_mode<synchronous>, transform_indices = @transform_12, window_bounds = array<i64: 1, 32>}, {pipeline_mode = #tpu.pipeline_mode<synchronous>, transform_indices = @transform_13, window_bounds = array<i64: 32, 64>}, {pipeline_mode = #tpu.pipeline_mode<synchronous>, transform_indices = @transform_14, window_bounds = array<i64: 1, 64>}, {pipeline_mode = #tpu.pipeline_mode<synchronous>, transform_indices = @transform_15, window_bounds = array<i64: 64, 32>}, {pipeline_mode = #tpu.pipeline_mode<synchronous>, transform_indices = @transform_16, window_bounds = array<i64: 1, 32>}, {pipeline_mode = #tpu.pipeline_mode<synchronous>, transform_indices = @transform_17, window_bounds = array<i64: 1, 32>}, {pipeline_mode = #tpu.pipeline_mode<synchronous>, transform_indices = @transform_18, window_bounds = array<i64: 1, 32>}, {transform_indices = @transform_19, window_bounds = array<i64: 1, 8, 32>}, {transform_indices = @transform_20, window_bounds = array<i64: 1, 4, 8, 8>}]} {
    %c0 = arith.constant 0 : index
    %c0_0 = arith.constant 0 : index
    %c0_1 = arith.constant 0 : index
    %0 = vector.load %arg2[%c0, %c0_0, %c0_1] : memref<1x8x32xf32, #tpu.memory_space<vmem>>, vector<1x8x32xf32>
    %1 = vector.shape_cast %0 : vector<1x8x32xf32> to vector<8x32xf32>
    %c0_2 = arith.constant 0 : index
    %c0_3 = arith.constant 0 : index
    %c0_4 = arith.constant 0 : index
    %2 = vector.load %arg2[%c0_2, %c0_3, %c0_4] : memref<1x8x32xf32, #tpu.memory_space<vmem>>, vector<1x8x32xf32>
    %3 = vector.shape_cast %2 : vector<1x8x32xf32> to vector<8x32xf32>
    %4 = arith.truncf %3 : vector<8x32xf32> to vector<8x32xbf16>
    %5 = vector.shape_cast %4 : vector<8x32xbf16> to vector<1x8x32xbf16>
    %6 = vector.shape_cast %5 : vector<1x8x32xbf16> to vector<1x8x32xbf16>
    %7 = vector.broadcast %6 : vector<1x8x32xbf16> to vector<4x8x32xbf16>
    %c0_5 = arith.constant 0 : index
    %c0_6 = arith.constant 0 : index
    %c0_7 = arith.constant 0 : index
    %8 = vector.load %arg3[%c0_5, %c0_6, %c0_7] : memref<1x8x32xf32, #tpu.memory_space<vmem>>, vector<1x8x32xf32>
    %9 = vector.shape_cast %8 : vector<1x8x32xf32> to vector<8x32xf32>
    %10 = arith.truncf %9 : vector<8x32xf32> to vector<8x32xbf16>
    %11 = vector.shape_cast %10 : vector<8x32xbf16> to vector<1x8x32xbf16>
    %12 = vector.shape_cast %11 : vector<1x8x32xbf16> to vector<1x8x32xbf16>
    %13 = vector.broadcast %12 : vector<1x8x32xbf16> to vector<4x8x32xbf16>
    %c0_8 = arith.constant 0 : index
    %c0_9 = arith.constant 0 : index
    %14 = vector.load %arg4[%c0_8, %c0_9] : memref<8x8xf32, #tpu.memory_space<vmem>>, vector<8x8xf32>
    %cst = arith.constant -1.000000e+09 : f32
    %cst_10 = arith.constant 0.353553385 : f32
    %15 = arith.mulf %cst, %cst_10 : f32
    %16 = vector.broadcast %15 : f32 to vector<8x8xf32>
    %17 = arith.mulf %14, %16 : vector<8x8xf32>
    %c0_11 = arith.constant 0 : index
    %c0_12 = arith.constant 0 : index
    %c0_13 = arith.constant 0 : index
    %18 = vector.load %arg5[%c0_11, %c0_12, %c0_13] : memref<4x32x8xbf16, #tpu.memory_space<vmem>>, vector<4x32x8xbf16>
    "tpu.trace_start"() <{level = 10 : i32, message = "hqd,hdc->hqc"}> : () -> ()
    %cst_14 = arith.constant dense<0.000000e+00> : vector<4x8x8xf32>
    %19 = tpu.matmul %7, %18, %cst_14 {dimension_numbers = #tpu.dot_dimension_numbers<[2], [1], [1], [2], [0, 0, 0, 1, 1, 2], [0], [0]>} : vector<4x8x32xbf16>, vector<4x32x8xbf16>, vector<4x8x8xf32> -> vector<4x8x8xf32>
    "tpu.trace_stop"() : () -> ()
    %c0_15 = arith.constant 0 : index
    %c0_16 = arith.constant 0 : index
    %c0_17 = arith.constant 0 : index
    %20 = vector.load %arg8[%c0_15, %c0_16, %c0_17] : memref<4x1x8xf32, #tpu.memory_space<vmem>>, vector<4x1x8xf32>
    %21 = vector.broadcast %20 : vector<4x1x8xf32> to vector<4x8x8xf32>
    %22 = arith.addf %19, %21 : vector<4x8x8xf32>
    %c0_18 = arith.constant 0 : index
    %c0_19 = arith.constant 0 : index
    %c0_20 = arith.constant 0 : index
    %23 = vector.load %arg6[%c0_18, %c0_19, %c0_20] : memref<4x32x8xbf16, #tpu.memory_space<vmem>>, vector<4x32x8xbf16>
    "tpu.trace_start"() <{level = 10 : i32, message = "hsd,hdc->hsc"}> : () -> ()
    %cst_21 = arith.constant dense<0.000000e+00> : vector<4x8x8xf32>
    %24 = tpu.matmul %13, %23, %cst_21 {dimension_numbers = #tpu.dot_dimension_numbers<[2], [1], [1], [2], [0, 0, 0, 1, 1, 2], [0], [0]>} : vector<4x8x32xbf16>, vector<4x32x8xbf16>, vector<4x8x8xf32> -> vector<4x8x8xf32>
    "tpu.trace_stop"() : () -> ()
    %c0_22 = arith.constant 0 : index
    %c0_23 = arith.constant 0 : index
    %c0_24 = arith.constant 0 : index
    %25 = vector.load %arg9[%c0_22, %c0_23, %c0_24] : memref<4x1x8xf32, #tpu.memory_space<vmem>>, vector<4x1x8xf32>
    %26 = vector.broadcast %25 : vector<4x1x8xf32> to vector<4x8x8xf32>
    %27 = arith.addf %24, %26 : vector<4x8x8xf32>
    %c0_25 = arith.constant 0 : index
    %c0_26 = arith.constant 0 : index
    %c0_27 = arith.constant 0 : index
    %28 = vector.load %arg7[%c0_25, %c0_26, %c0_27] : memref<4x32x8xbf16, #tpu.memory_space<vmem>>, vector<4x32x8xbf16>
    "tpu.trace_start"() <{level = 10 : i32, message = "hsd,hdc->hsc"}> : () -> ()
    %cst_28 = arith.constant dense<0.000000e+00> : vector<4x8x8xf32>
    %29 = tpu.matmul %13, %28, %cst_28 {dimension_numbers = #tpu.dot_dimension_numbers<[2], [1], [1], [2], [0, 0, 0, 1, 1, 2], [0], [0]>} : vector<4x8x32xbf16>, vector<4x32x8xbf16>, vector<4x8x8xf32> -> vector<4x8x8xf32>
    "tpu.trace_stop"() : () -> ()
    %c0_29 = arith.constant 0 : index
    %c0_30 = arith.constant 0 : index
    %c0_31 = arith.constant 0 : index
    %30 = vector.load %arg10[%c0_29, %c0_30, %c0_31] : memref<4x1x8xf32, #tpu.memory_space<vmem>>, vector<4x1x8xf32>
    %31 = vector.broadcast %30 : vector<4x1x8xf32> to vector<4x8x8xf32>
    %32 = arith.addf %29, %31 : vector<4x8x8xf32>
    %33 = arith.truncf %22 : vector<4x8x8xf32> to vector<4x8x8xbf16>
    %34 = arith.truncf %27 : vector<4x8x8xf32> to vector<4x8x8xbf16>
    "tpu.trace_start"() <{level = 10 : i32, message = "hqc,hsc->hqs"}> : () -> ()
    %cst_32 = arith.constant dense<0.000000e+00> : vector<4x8x8xf32>
    %35 = tpu.matmul %33, %34, %cst_32 {dimension_numbers = #tpu.dot_dimension_numbers<[2], [2], [1], [1], [0, 0, 0, 1, 1, 1], [0], [0]>} : vector<4x8x8xbf16>, vector<4x8x8xbf16>, vector<4x8x8xf32> -> vector<4x8x8xf32>
    "tpu.trace_stop"() : () -> ()
    %cst_33 = arith.constant 0.353553385 : f32
    %36 = vector.broadcast %cst_33 : f32 to vector<4x8x8xf32>
    %37 = arith.mulf %35, %36 : vector<4x8x8xf32>
    %38 = vector.shape_cast %17 : vector<8x8xf32> to vector<1x8x8xf32>
    %39 = vector.broadcast %38 : vector<1x8x8xf32> to vector<4x8x8xf32>
    %40 = arith.addf %37, %39 : vector<4x8x8xf32>
    %cst_34 = arith.constant dense<0xFF800000> : vector<4x8xf32>
    %41 = vector.multi_reduction <maximumf>, %40, %cst_34 [2] : vector<4x8x8xf32> to vector<4x8xf32>
    %42 = vector.shape_cast %41 : vector<4x8xf32> to vector<4x8x1xf32>
    %43 = vector.broadcast %42 : vector<4x8x1xf32> to vector<4x8x8xf32>
    %44 = arith.subf %40, %43 : vector<4x8x8xf32>
    %45 = math.exp %44 : vector<4x8x8xf32>
    %cst_35 = arith.constant dense<0.000000e+00> : vector<4x8xf32>
    %46 = vector.multi_reduction <add>, %45, %cst_35 [2] : vector<4x8x8xf32> to vector<4x8xf32>
    %47 = vector.shape_cast %46 : vector<4x8xf32> to vector<4x8x1xf32>
    %48 = vector.broadcast %47 : vector<4x8x1xf32> to vector<4x8x8xf32>
    %49 = arith.divf %45, %48 : vector<4x8x8xf32>
    %c0_36 = arith.constant 0 : index
    %c0_37 = arith.constant 0 : index
    %c0_38 = arith.constant 0 : index
    %c0_39 = arith.constant 0 : index
    %50 = vector.load %arg22[%c0_36, %c0_37, %c0_38, %c0_39] : memref<1x4x8x8xf32, #tpu.memory_space<vmem>>, vector<1x4x8x8xf32>
    %51 = vector.shape_cast %50 : vector<1x4x8x8xf32> to vector<4x8x8xf32>
    %52 = vector.shape_cast %49 : vector<4x8x8xf32> to vector<1x4x8x8xf32>
    tpu.vector_store %arg22[%c0_36, %c0_37, %c0_38, %c0_39], %52 {strides = array<i32>} : memref<1x4x8x8xf32, #tpu.memory_space<vmem>>, vector<1x4x8x8xf32>,
    %53 = arith.truncf %49 : vector<4x8x8xf32> to vector<4x8x8xbf16>
    %54 = arith.truncf %32 : vector<4x8x8xf32> to vector<4x8x8xbf16>
    "tpu.trace_start"() <{level = 10 : i32, message = "hqs,hsc->hqc"}> : () -> ()
    %cst_40 = arith.constant dense<0.000000e+00> : vector<4x8x8xf32>
    %55 = tpu.matmul %53, %54, %cst_40 {dimension_numbers = #tpu.dot_dimension_numbers<[2], [1], [1], [2], [0, 0, 0, 1, 1, 2], [0], [0]>} : vector<4x8x8xbf16>, vector<4x8x8xbf16>, vector<4x8x8xf32> -> vector<4x8x8xf32>
    "tpu.trace_stop"() : () -> ()
    %56 = arith.truncf %55 : vector<4x8x8xf32> to vector<4x8x8xbf16>
    %c0_41 = arith.constant 0 : index
    %c0_42 = arith.constant 0 : index
    %c0_43 = arith.constant 0 : index
    %57 = vector.load %arg11[%c0_41, %c0_42, %c0_43] : memref<4x8x32xbf16, #tpu.memory_space<vmem>>, vector<4x8x32xbf16>
    "tpu.trace_start"() <{level = 10 : i32, message = "hqc,hcd->hqd"}> : () -> ()
    %cst_44 = arith.constant dense<0.000000e+00> : vector<4x8x32xf32>
    %58 = tpu.matmul %56, %57, %cst_44 {dimension_numbers = #tpu.dot_dimension_numbers<[2], [1], [1], [2], [0, 0, 0, 1, 1, 2], [0], [0]>} : vector<4x8x8xbf16>, vector<4x8x32xbf16>, vector<4x8x32xf32> -> vector<4x8x32xf32>
    "tpu.trace_stop"() : () -> ()
    %cst_45 = arith.constant dense<0.000000e+00> : vector<8x32xf32>
    %59 = vector.multi_reduction <add>, %58, %cst_45 [0] : vector<4x8x32xf32> to vector<8x32xf32>
    %c0_46 = arith.constant 0 : index
    %c0_47 = arith.constant 0 : index
    %60 = vector.load %arg12[%c0_46, %c0_47] : memref<1x32xf32, #tpu.memory_space<vmem>>, vector<1x32xf32>
    %61 = vector.shape_cast %60 : vector<1x32xf32> to vector<32xf32>
    %62 = vector.shape_cast %61 : vector<32xf32> to vector<1x32xf32>
    %63 = vector.broadcast %62 : vector<1x32xf32> to vector<8x32xf32>
    %64 = arith.addf %59, %63 : vector<8x32xf32>
    %65 = arith.addf %1, %64 : vector<8x32xf32>
    %c0_48 = arith.constant 0 : index
    %c0_49 = arith.constant 0 : index
    %66 = vector.load %arg13[%c0_48, %c0_49] : memref<1x32xf32, #tpu.memory_space<vmem>>, vector<1x32xf32>
    %67 = vector.shape_cast %66 : vector<1x32xf32> to vector<32xf32>
    %c0_50 = arith.constant 0 : index
    %c0_51 = arith.constant 0 : index
    %68 = vector.load %arg14[%c0_50, %c0_51] : memref<1x32xf32, #tpu.memory_space<vmem>>, vector<1x32xf32>
    %69 = vector.shape_cast %68 : vector<1x32xf32> to vector<32xf32>
    %cst_52 = arith.constant dense<0.000000e+00> : vector<8xf32>
    %70 = vector.multi_reduction <add>, %65, %cst_52 [1] : vector<8x32xf32> to vector<8xf32>
    %71 = vector.shape_cast %70 : vector<8xf32> to vector<8x1xf32>
    %cst_53 = arith.constant 3.200000e+01 : f32
    %72 = vector.broadcast %cst_53 : f32 to vector<8x1xf32>
    %73 = arith.divf %71, %72 : vector<8x1xf32>
    %74 = vector.broadcast %73 : vector<8x1xf32> to vector<8x32xf32>
    %75 = arith.subf %65, %74 : vector<8x32xf32>
    %76 = arith.mulf %75, %75 : vector<8x32xf32>
    %cst_54 = arith.constant dense<0.000000e+00> : vector<8xf32>
    %77 = vector.multi_reduction <add>, %76, %cst_54 [1] : vector<8x32xf32> to vector<8xf32>
    %78 = vector.shape_cast %77 : vector<8xf32> to vector<8x1xf32>
    %cst_55 = arith.constant 3.200000e+01 : f32
    %79 = vector.broadcast %cst_55 : f32 to vector<8x1xf32>
    %80 = arith.divf %78, %79 : vector<8x1xf32>
    %81 = vector.broadcast %73 : vector<8x1xf32> to vector<8x32xf32>
    %82 = arith.subf %65, %81 : vector<8x32xf32>
    %cst_56 = arith.constant 9.99999974E-6 : f32
    %83 = vector.broadcast %cst_56 : f32 to vector<8x1xf32>
    %84 = arith.addf %80, %83 : vector<8x1xf32>
    %85 = math.rsqrt %84 : vector<8x1xf32>
    %86 = vector.broadcast %85 : vector<8x1xf32> to vector<8x32xf32>
    %87 = arith.mulf %82, %86 : vector<8x32xf32>
    %88 = vector.shape_cast %67 : vector<32xf32> to vector<1x32xf32>
    %89 = vector.broadcast %88 : vector<1x32xf32> to vector<8x32xf32>
    %90 = arith.mulf %87, %89 : vector<8x32xf32>
    %91 = vector.shape_cast %69 : vector<32xf32> to vector<1x32xf32>
    %92 = vector.broadcast %91 : vector<1x32xf32> to vector<8x32xf32>
    %93 = arith.addf %90, %92 : vector<8x32xf32>
    %94 = arith.truncf %93 : vector<8x32xf32> to vector<8x32xbf16>
    %c0_57 = arith.constant 0 : index
    %c0_58 = arith.constant 0 : index
    %95 = vector.load %arg15[%c0_57, %c0_58] : memref<32x64xbf16, #tpu.memory_space<vmem>>, vector<32x64xbf16>
    %cst_59 = arith.constant dense<0.000000e+00> : vector<8x64xf32>
    %96 = tpu.matmul %94, %95, %cst_59 {dimension_numbers = #tpu.dot_dimension_numbers<[1], [0], [0], [1], [0, 0, 1, 1], [], []>} : vector<8x32xbf16>, vector<32x64xbf16>, vector<8x64xf32> -> vector<8x64xf32>
    %c0_60 = arith.constant 0 : index
    %c0_61 = arith.constant 0 : index
    %97 = vector.load %arg16[%c0_60, %c0_61] : memref<1x64xf32, #tpu.memory_space<vmem>>, vector<1x64xf32>
    %98 = vector.shape_cast %97 : vector<1x64xf32> to vector<64xf32>
    %99 = vector.shape_cast %98 : vector<64xf32> to vector<1x64xf32>
    %100 = vector.broadcast %99 : vector<1x64xf32> to vector<8x64xf32>
    %101 = arith.addf %96, %100 : vector<8x64xf32>
    %cst_62 = arith.constant 0.000000e+00 : f32
    %102 = vector.broadcast %cst_62 : f32 to vector<8x64xf32>
    %103 = arith.maximumf %101, %102 : vector<8x64xf32>
    %104 = arith.truncf %103 : vector<8x64xf32> to vector<8x64xbf16>
    %c0_63 = arith.constant 0 : index
    %c0_64 = arith.constant 0 : index
    %105 = vector.load %arg17[%c0_63, %c0_64] : memref<64x32xbf16, #tpu.memory_space<vmem>>, vector<64x32xbf16>
    %cst_65 = arith.constant dense<0.000000e+00> : vector<8x32xf32>
    %106 = tpu.matmul %104, %105, %cst_65 {dimension_numbers = #tpu.dot_dimension_numbers<[1], [0], [0], [1], [0, 0, 1, 1], [], []>} : vector<8x64xbf16>, vector<64x32xbf16>, vector<8x32xf32> -> vector<8x32xf32>
    %c0_66 = arith.constant 0 : index
    %c0_67 = arith.constant 0 : index
    %107 = vector.load %arg18[%c0_66, %c0_67] : memref<1x32xf32, #tpu.memory_space<vmem>>, vector<1x32xf32>
    %108 = vector.shape_cast %107 : vector<1x32xf32> to vector<32xf32>
    %109 = vector.shape_cast %108 : vector<32xf32> to vector<1x32xf32>
    %110 = vector.broadcast %109 : vector<1x32xf32> to vector<8x32xf32>
    %111 = arith.addf %106, %110 : vector<8x32xf32>
    %112 = arith.addf %93, %111 : vector<8x32xf32>
    %c0_68 = arith.constant 0 : index
    %c0_69 = arith.constant 0 : index
    %113 = vector.load %arg19[%c0_68, %c0_69] : memref<1x32xf32, #tpu.memory_space<vmem>>, vector<1x32xf32>
    %114 = vector.shape_cast %113 : vector<1x32xf32> to vector<32xf32>
    %c0_70 = arith.constant 0 : index
    %c0_71 = arith.constant 0 : index
    %115 = vector.load %arg20[%c0_70, %c0_71] : memref<1x32xf32, #tpu.memory_space<vmem>>, vector<1x32xf32>
    %116 = vector.shape_cast %115 : vector<1x32xf32> to vector<32xf32>
    %cst_72 = arith.constant dense<0.000000e+00> : vector<8xf32>
    %117 = vector.multi_reduction <add>, %112, %cst_72 [1] : vector<8x32xf32> to vector<8xf32>
    %118 = vector.shape_cast %117 : vector<8xf32> to vector<8x1xf32>
    %cst_73 = arith.constant 3.200000e+01 : f32
    %119 = vector.broadcast %cst_73 : f32 to vector<8x1xf32>
    %120 = arith.divf %118, %119 : vector<8x1xf32>
    %121 = vector.broadcast %120 : vector<8x1xf32> to vector<8x32xf32>
    %122 = arith.subf %112, %121 : vector<8x32xf32>
    %123 = arith.mulf %122, %122 : vector<8x32xf32>
    %cst_74 = arith.constant dense<0.000000e+00> : vector<8xf32>
    %124 = vector.multi_reduction <add>, %123, %cst_74 [1] : vector<8x32xf32> to vector<8xf32>
    %125 = vector.shape_cast %124 : vector<8xf32> to vector<8x1xf32>
    %cst_75 = arith.constant 3.200000e+01 : f32
    %126 = vector.broadcast %cst_75 : f32 to vector<8x1xf32>
    %127 = arith.divf %125, %126 : vector<8x1xf32>
    %128 = vector.broadcast %120 : vector<8x1xf32> to vector<8x32xf32>
    %129 = arith.subf %112, %128 : vector<8x32xf32>
    %cst_76 = arith.constant 9.99999974E-6 : f32
    %130 = vector.broadcast %cst_76 : f32 to vector<8x1xf32>
    %131 = arith.addf %127, %130 : vector<8x1xf32>
    %132 = math.rsqrt %131 : vector<8x1xf32>
    %133 = vector.broadcast %132 : vector<8x1xf32> to vector<8x32xf32>
    %134 = arith.mulf %129, %133 : vector<8x32xf32>
    %135 = vector.shape_cast %114 : vector<32xf32> to vector<1x32xf32>
    %136 = vector.broadcast %135 : vector<1x32xf32> to vector<8x32xf32>
    %137 = arith.mulf %134, %136 : vector<8x32xf32>
    %138 = vector.shape_cast %116 : vector<32xf32> to vector<1x32xf32>
    %139 = vector.broadcast %138 : vector<1x32xf32> to vector<8x32xf32>
    %140 = arith.addf %137, %139 : vector<8x32xf32>
    %c0_77 = arith.constant 0 : index
    %c0_78 = arith.constant 0 : index
    %c0_79 = arith.constant 0 : index
    %141 = vector.load %arg21[%c0_77, %c0_78, %c0_79] : memref<1x8x32xf32, #tpu.memory_space<vmem>>, vector<1x8x32xf32>
    %142 = vector.shape_cast %141 : vector<1x8x32xf32> to vector<8x32xf32>
    %143 = vector.shape_cast %140 : vector<8x32xf32> to vector<1x8x32xf32>
    tpu.vector_store %arg21[%c0_77, %c0_78, %c0_79], %143 {strides = array<i32>} : memref<1x8x32xf32, #tpu.memory_space<vmem>>, vector<1x8x32xf32>,
    return
  }
  func.func @transform_0(%arg0: i32, %arg1: i32) -> (i32, i32, i32) {
    %c0_i32 = arith.constant 0 : i32
    %c0_i32_0 = arith.constant 0 : i32
    return %arg0, %arg1, %c0_i32 : i32, i32, i32
  }
  func.func @transform_1(%arg0: i32, %arg1: i32) -> (i32, i32, i32) {
    %c0_i32 = arith.constant 0 : i32
    %c0_i32_0 = arith.constant 0 : i32
    %c0_i32_1 = arith.constant 0 : i32
    return %arg0, %c0_i32, %c0_i32_0 : i32, i32, i32
  }
  func.func @transform_2(%arg0: i32, %arg1: i32) -> (i32, i32) {
    %c0_i32 = arith.constant 0 : i32
    %c0_i32_0 = arith.constant 0 : i32
    return %arg1, %c0_i32 : i32, i32
  }
  func.func @transform_3(%arg0: i32, %arg1: i32) -> (i32, i32, i32) {
    %c0_i32 = arith.constant 0 : i32
    %c0_i32_0 = arith.constant 0 : i32
    %c0_i32_1 = arith.constant 0 : i32
    %c0_i32_2 = arith.constant 0 : i32
    return %c0_i32, %c0_i32_0, %c0_i32_1 : i32, i32, i32
  }
  func.func @transform_4(%arg0: i32, %arg1: i32) -> (i32, i32, i32) {
    %c0_i32 = arith.constant 0 : i32
    %c0_i32_0 = arith.constant 0 : i32
    %c0_i32_1 = arith.constant 0 : i32
    %c0_i32_2 = arith.constant 0 : i32
    return %c0_i32, %c0_i32_0, %c0_i32_1 : i32, i32, i32
  }
  func.func @transform_5(%arg0: i32, %arg1: i32) -> (i32, i32, i32) {
    %c0_i32 = arith.constant 0 : i32
    %c0_i32_0 = arith.constant 0 : i32
    %c0_i32_1 = arith.constant 0 : i32
    %c0_i32_2 = arith.constant 0 : i32
    return %c0_i32, %c0_i32_0, %c0_i32_1 : i32, i32, i32
  }
  func.func @transform_6(%arg0: i32, %arg1: i32) -> (i32, i32, i32) {
    %c0_i32 = arith.constant 0 : i32
    %c0_i32_0 = arith.constant 0 : i32
    %c0_i32_1 = arith.constant 0 : i32
    %c0_i32_2 = arith.constant 0 : i32
    return %c0_i32, %c0_i32_0, %c0_i32_1 : i32, i32, i32
  }
  func.func @transform_7(%arg0: i32, %arg1: i32) -> (i32, i32, i32) {
    %c0_i32 = arith.constant 0 : i32
    %c0_i32_0 = arith.constant 0 : i32
    %c0_i32_1 = arith.constant 0 : i32
    %c0_i32_2 = arith.constant 0 : i32
    return %c0_i32, %c0_i32_0, %c0_i32_1 : i32, i32, i32
  }
  func.func @transform_8(%arg0: i32, %arg1: i32) -> (i32, i32, i32) {
    %c0_i32 = arith.constant 0 : i32
    %c0_i32_0 = arith.constant 0 : i32
    %c0_i32_1 = arith.constant 0 : i32
    %c0_i32_2 = arith.constant 0 : i32
    return %c0_i32, %c0_i32_0, %c0_i32_1 : i32, i32, i32
  }
  func.func @transform_9(%arg0: i32, %arg1: i32) -> (i32, i32, i32) {
    %c0_i32 = arith.constant 0 : i32
    %c0_i32_0 = arith.constant 0 : i32
    %c0_i32_1 = arith.constant 0 : i32
    %c0_i32_2 = arith.constant 0 : i32
    return %c0_i32, %c0_i32_0, %c0_i32_1 : i32, i32, i32
  }
  func.func @transform_10(%arg0: i32, %arg1: i32) -> (i32, i32) {
    %c0_i32 = arith.constant 0 : i32
    %c0_i32_0 = arith.constant 0 : i32
    %c0_i32_1 = arith.constant 0 : i32
    return %c0_i32, %c0_i32_0 : i32, i32
  }
  func.func @transform_11(%arg0: i32, %arg1: i32) -> (i32, i32) {
    %c0_i32 = arith.constant 0 : i32
    %c0_i32_0 = arith.constant 0 : i32
    %c0_i32_1 = arith.constant 0 : i32
    return %c0_i32, %c0_i32_0 : i32, i32
  }
  func.func @transform_12(%arg0: i32, %arg1: i32) -> (i32, i32) {
    %c0_i32 = arith.constant 0 : i32
    %c0_i32_0 = arith.constant 0 : i32
    %c0_i32_1 = arith.constant 0 : i32
    return %c0_i32, %c0_i32_0 : i32, i32
  }
  func.func @transform_13(%arg0: i32, %arg1: i32) -> (i32, i32) {
    %c0_i32 = arith.constant 0 : i32
    %c0_i32_0 = arith.constant 0 : i32
    %c0_i32_1 = arith.constant 0 : i32
    return %c0_i32, %c0_i32_0 : i32, i32
  }
  func.func @transform_14(%arg0: i32, %arg1: i32) -> (i32, i32) {
    %c0_i32 = arith.constant 0 : i32
    %c0_i32_0 = arith.constant 0 : i32
    %c0_i32_1 = arith.constant 0 : i32
    return %c0_i32, %c0_i32_0 : i32, i32
  }
  func.func @transform_15(%arg0: i32, %arg1: i32) -> (i32, i32) {
    %c0_i32 = arith.constant 0 : i32
    %c0_i32_0 = arith.constant 0 : i32
    %c0_i32_1 = arith.constant 0 : i32
    return %c0_i32, %c0_i32_0 : i32, i32
  }
  func.func @transform_16(%arg0: i32, %arg1: i32) -> (i32, i32) {
    %c0_i32 = arith.constant 0 : i32
    %c0_i32_0 = arith.constant 0 : i32
    %c0_i32_1 = arith.constant 0 : i32
    return %c0_i32, %c0_i32_0 : i32, i32
  }
  func.func @transform_17(%arg0: i32, %arg1: i32) -> (i32, i32) {
    %c0_i32 = arith.constant 0 : i32
    %c0_i32_0 = arith.constant 0 : i32
    %c0_i32_1 = arith.constant 0 : i32
    return %c0_i32, %c0_i32_0 : i32, i32
  }
  func.func @transform_18(%arg0: i32, %arg1: i32) -> (i32, i32) {
    %c0_i32 = arith.constant 0 : i32
    %c0_i32_0 = arith.constant 0 : i32
    %c0_i32_1 = arith.constant 0 : i32
    return %c0_i32, %c0_i32_0 : i32, i32
  }
  func.func @transform_19(%arg0: i32, %arg1: i32) -> (i32, i32, i32) {
    %c0_i32 = arith.constant 0 : i32
    %c0_i32_0 = arith.constant 0 : i32
    return %arg0, %arg1, %c0_i32 : i32, i32, i32
  }
  func.func @transform_20(%arg0: i32, %arg1: i32) -> (i32, i32, i32, i32) {
    %c0_i32 = arith.constant 0 : i32
    %c0_i32_0 = arith.constant 0 : i32
    %c0_i32_1 = arith.constant 0 : i32
    return %arg0, %c0_i32, %arg1, %c0_i32_0 : i32, i32, i32, i32
  }
}

</mosaic_0001>

<bundles_post_ra>
// kernel: tpu_custom_call.1
= control target key start
LH: loop header
LB: loop body
LE: loop exit
PB: predicated region body
PF: predicated region fallthrough
CT: control target
= control target key end

     0   :  { %s2711_s0 = inlined_call_operand.vmem [shape: f32[2,8,32], index: 0, kind: input, shape index: {}]   ;;  %s2712_s1 = inlined_call_operand.vmem [shape: f32[2,8,32], index: 1, kind: input, shape index: {}]   ;;  %s2713_s2 = inlined_call_operand.vmem [shape: f32[8,8], index: 2, kind: input, shape index: {}]   ;;  %s2714_s3 = inlined_call_operand.vmem [shape: bf16[4,32,8], index: 3, kind: input, shape index: {}]   ;;  %s2715_s4 = inlined_call_operand.vmem [shape: bf16[4,32,8], index: 4, kind: input, shape index: {}]   ;;  %s2716_s5 = inlined_call_operand.vmem [shape: bf16[4,32,8], index: 5, kind: input, shape index: {}]   ;;  %s2717_s6 = inlined_call_operand.vmem [shape: f32[4,1,8], index: 6, kind: input, shape index: {}]   ;;  %s2718_s7 = inlined_call_operand.vmem [shape: f32[4,1,8], index: 7, kind: input, shape index: {}]   ;;  %s2719_s8 = inlined_call_operand.vmem [shape: f32[4,1,8], index: 8, kind: input, shape index: {}]   ;;  %s2720_s9 = inlined_call_operand.vmem [shape: bf16[4,8,32], index: 9, kind: input, shape index: {}]   ;;  %s2721_s10 = inlined_call_operand.vmem [shape: f32[1,32], index: 10, kind: input, shape index: {}]   ;;  %s2722_s11 = inlined_call_operand.vmem [shape: f32[1,32], index: 11, kind: input, shape index: {}]   ;;  %s2723_s12 = inlined_call_operand.vmem [shape: f32[1,32], index: 12, kind: input, shape index: {}]   ;;  %s2724_s13 = inlined_call_operand.vmem [shape: bf16[32,64], index: 13, kind: input, shape index: {}]   ;;  %s2725_s14 = inlined_call_operand.vmem [shape: f32[1,64], index: 14, kind: input, shape index: {}]   ;;  %s2726_s15 = inlined_call_operand.vmem [shape: bf16[64,32], index: 15, kind: input, shape index: {}]   ;;  %s2727_s16 = inlined_call_operand.vmem [shape: f32[1,32], index: 16, kind: input, shape index: {}]   ;;  %s2728_s17 = inlined_call_operand.vmem [shape: f32[1,32], index: 17, kind: input, shape index: {}]   ;;  %s2729_s18 = inlined_call_operand.vmem [shape: f32[1,32], index: 18, kind: input, shape index: {}]   ;;  %s2730_s19 = inlined_call_operand.hbm [shape: f32[2,8,32], index: 19, kind: output, shape index: {0}]   ;;  %s2731_s20 = inlined_call_operand.hbm [shape: f32[2,4,8,8], index: 20, kind: output, shape index: {1}]  }
   0x1   :  { %2745 = sst [smem:[#allocation16_spill]] %s2711_s0 }
   0x2   :  { %2746 = sst [smem:[#allocation17_spill]] %s2712_s1 }
   0x3   :  { %2747 = sst [smem:[#allocation18_spill]] %s2713_s2 }
   0x4   :  { %2748 = sst [smem:[#allocation19_spill]] %s2714_s3 }
   0x5   :  { %2749 = sst [smem:[#allocation20_spill]] %s2715_s4 }
   0x6   :  { %2750 = sst [smem:[#allocation21_spill]] %s2716_s5 }
   0x7   :  { %2751 = sst [smem:[#allocation22_spill]] %s2717_s6 }
   0x8   :  { %2752 = sst [smem:[#allocation23_spill]] %s2727_s16 }
   0x9   :  { %2753 = sst [smem:[#allocation24_spill]] %s2728_s17 }
   0xa   :  { %2754 = sst [smem:[#allocation25_spill]] %s2729_s18 }
   0xb   :  { %2755 = sst [smem:[#allocation26_spill]] %s2730_s19 }
   0xc   :  { %2756 = sst [smem:[#allocation27_spill]] %s2731_s20 }
   0xd   :  { %26 = vsyncpa [#allocation3], 0 }
   0xe   :  { %28 = vsyncpa [#allocation3 + $0x1], 0 }
   0xf   :  { %29 = vsyncpa [#allocation5], 0 }
  0x10   :  { %31 = vsyncpa [#allocation5 + $0x1], 0  ;;  %s2338_s1 = smov 0   ;;  %s2340_s22 = smov 0  }
  0x11   :  { %s2342_s23 = smov 0   ;;  %s2344_s24 = smov 0  }
  0x12   :  { %s2346_s2 = smov 0   ;;  %s2348_s25 = smov 0  }
  0x13 LB: > { %2757 = sst [smem:[#allocation8_spill]] %s2208_s1  ;;  %s1820_s3 = sadd.s32 4294967295, %s2228_s25   ;;  %s2228_s25 = sphi %s2348_s25, %s37_s25   ;;  %s2224_s2 = sphi %s2346_s2, %s2788_s2   ;;  %s2220_s24 = sphi %s2344_s24, %s2787_s24   ;;  %s2216_s23 = sphi %s2342_s23, %s2786_s23   ;;  %s2212_s22 = sphi %s2340_s22, %s2790_s22   ;;  %s2208_s1 = sphi %s2338_s1, %s2789_s1  }
  0x14   : > { %2758 = sst [smem:[#allocation9_spill]] %s2216_s23  ;;  %s1821_s26 = sadd.s32 4294967294, %s2228_s25  }
  0x15   : > { %2759 = sst [smem:[#allocation10_spill]] %s2224_s2  ;;  %s49_s27 = sadd.s32 1, %s2224_s2 }
  0x16   : > { %2760 = sst [smem:[#allocation11_spill]] %s2228_s25  ;;  %s474_s28 = sadd.s32 1, %s2216_s23 }
  0x17   : > { %p51_p0 = scmp.ge.s32.totalorder %s49_s27, 2  ;;  %p484_p1 = scmp.ne.s32.totalorder %s2216_s23, %s2212_s22 }
  0x18   : > { %p485_p2 = scmp.eq.s32.totalorder %s1820_s3, 1  ;;  %p490_p3 = scmp.ne.s32.totalorder %s2212_s22, %s2208_s1 }
  0x19   : > { %s2792_s27 = smov (%p51_p0, %s49_s27), 0  ;;  %p491_p5 = scmp.eq.s32.totalorder %s1821_s26, 1 }
  0x1a   : > { %2761 = sst [smem:[#allocation12_spill]] %s2792_s27  ;;  %p2378_p4 = por %p485_p2, %p484_p1 }
  0x1b   : > { %s469_s29 = ssub.s32 %s2224_s2, %s2792_s27  ;;  %p1825_p6 = scmp.ge.s32.totalorder %s2228_s25, 1 }
  0x1c   : > { %s2762_s4 = scalar_select %p2378_p4, 1, 0 }
  0x1d   : > { %p472_p7 = scmp.eq.s32.totalorder %s469_s29, 0  ;;  %p2385_p8 = por %p491_p5, %p490_p3 }
  0x1e   : > { %2763 = sst [smem:[#allocation13_spill]] %s2762_s4  ;;  %p609_p9 = scmp.lt.s32.totalorder %s2228_s25, 3 }
  0x1f   : > { %s2764_s30 = scalar_select %p2385_p8, 1, 0 }
  0x20   : > { %s2391_s0 = scalar_select %p472_p7, %s2216_s23, %s474_s28  }
  0x21   : > { %2765 = sst [smem:[#allocation14_spill]] %s2764_s30  ;;  %p610_p10 = pnand %p1825_p6, %p609_p9 }
  0x22   : > { %2766 = sst [smem:[#allocation15_spill]] %s2391_s0  ;;  %p682_p11 = scmp.lt.s32.totalorder (!%p610_p10), %s2220_s24, 1 }
  0x23   : > { %613 = sbr.rel (%p610_p10) target bundleno = 1697 (0x6a1), region = 96  ;;  %s2767_s1 = sld [smem:[#allocation19_spill]] (!%p610_p10) }
  0x24   : > { %s2769_s23 = sld [smem:[#allocation20_spill]] (!%p610_p10)  ;;  %s2013_s2 = sshll.u32 (!%p610_p10), %s2220_s24, 5 }
  0x25   : > { %s2771_s20 = sld [smem:[#allocation16_spill]] (!%p610_p10) }
  0x26   : > { %s2773_s5 = sld [smem:[#allocation21_spill]] (!%p610_p10) }
  0x27   : > { %s2774_s6 = sld [smem:[#allocation22_spill]] (!%p610_p10) }
  0x28   : > { %s2413_s19 = scalar_select %p682_p11, %s2220_s24, 1  ;;  %vm748_vm0 = vcmask 261120   ;;  %v2081_v34 = vld [vmem:[%s2718_s7] ss:$0 sm:$0xff]  ;;  %v2082_v35 = vld [vmem:[%s2718_s7 + $0x1] ss:$0 sm:$0xff] }
  0x29   : > { %s2768_s18 = smov %s2767_s1  ;;  %v1984_v0 = vld [vmem:[%s2767_s1 + $0x8] sm:$0xff]  ;;  %s2772_s1 = sld [smem:[#allocation17_spill]]  ;;  %vm1115_vm1 = vcmask 64512   ;;  %v2083_v46 = vld [vmem:[%s2718_s7 + $0x2] ss:$0 sm:$0xff]  ;;  %vm1311_vm2 = vcmask 1043456  }
  0x2a   : > { %v1986_v1 = vld [vmem:[%s2768_s18 + $0x18] sm:$0xff]  ;;  %v1988_v2 = vld [vmem:[%s2768_s18 + $0x28] sm:$0xff]  ;;  %758 = vmatpush.bf16.msra.mxu0 %v1984_v0  ;;  %v1983_v4 = vld [vmem:[%s2768_s18] sm:$0xff]  ;;  %s1828_s28 = sshll.u32 %s2413_s19, 3  ;;  %s2770_s30 = smov %s2769_s23 }
  0x2b   : > { %v1990_v3 = vld [vmem:[%s2768_s18 + $0x38] sm:$0xff]  ;;  %783 = vmatpush.bf16.msra.mxu1 %v1986_v1  ;;  %v1985_v5 = vld [vmem:[%s2768_s18 + $0x10] sm:$0xff]  ;;  %808 = vmatpush.bf16.msra.mxu2 %v1988_v2  ;;  %v1987_v6 = vld [vmem:[%s2768_s18 + $0x20] sm:$0xff]  ;;  %s688_s4 = scalar_lea.vmem %s2771_s20, %s1828_s28  ;;  %s2775_s25 = sld [smem:[#allocation18_spill]] }
  0x2c   : > { %833 = vmatpush.bf16.msra.mxu3 %v1990_v3  ;;  %v1989_v7 = vld [vmem:[%s2768_s18 + $0x30] sm:$0xff]  ;;  %v1992_v8 = vld [vmem:[%s2769_s23 + $0x8] sm:$0xff]  ;;  %v1994_v9 = vld [vmem:[%s2770_s30 + $0x18] sm:$0xff]  ;;  %s2776_s27 = sld [smem:[#allocation23_spill]] }
  0x2d   : > { %v1996_v10 = vld [vmem:[%s2770_s30 + $0x28] sm:$0xff]  ;;  %v1998_v11 = vld [vmem:[%s2770_s30 + $0x38] sm:$0xff]  ;;  %v2437_v12 = vld [vmem:[%s688_s4] sm:$0xff]  ;;  %s2561_s4 = sand.u32 1, %s2212_s22   ;;  %s2778_s19 = sld [smem:[#allocation27_spill]] }
  0x2e   : > { %759 = vmatpush.bf16.msra.mxu0 %v1983_v4  ;;  %v1991_v13 = vld [vmem:[%s2770_s30] sm:$0xff]  ;;  %v1993_v14 = vld [vmem:[%s2770_s30 + $0x10] sm:$0xff]  ;;  %v699_v15 = vpack.c.bf16 %v2437_v12, %v2437_v12  ;;  %v2004_v20 = vld [vmem:[%s2773_s5 + $0x28] sm:$0xff]  ;;  %s1827_s0 = sshll.u32 %s2561_s4, 5  ;;  %s1653_s20 = scalar_lea.sflag [#allocation5], %s2561_s4 }
  0x2f   : > { %784 = vmatpush.bf16.msra.mxu1 %v1985_v5  ;;  %809 = vmatpush.bf16.msra.mxu2 %v1987_v6  ;;  %v1995_v16 = vld [vmem:[%s2770_s30 + $0x20] sm:$0xff]  ;;  %v1997_v17 = vld [vmem:[%s2770_s30 + $0x30] sm:$0xff]  ;;  %s692_s3 = scalar_lea.vmem %s2772_s1, %s1828_s28  ;;  %v2000_v21 = vld [vmem:[%s2773_s5 + $0x8] sm:$0xff]  ;;  %s2564_s21 = scalar_lea.vmem [#allocation4], %s1827_s0 }
  0x30   : > { %834 = vmatpush.bf16.msra.mxu3 %v1989_v7  ;;  %v700_v18 = vld [vmem:[%s692_s3] sm:$0xff]  ;;  %v2002_v22 = vld [vmem:[%s2773_s5 + $0x18] sm:$0xff]  ;;  %v2001_v25 = vld [vmem:[%s2773_s5 + $0x10] sm:$0xff]  ;;  %s1681_s17 = sshll.u32 %s2564_s21, 4  ;;  %s1682_s17 = int_to_ptr.vmem [resolvable:$true] %s1681_s17 }
  0x31   : > { %1838 = vmatmul.msk.bf16.vlgmr.msra.gmra.mxu0 %vm748_vm0, %v699_v15  ;;  %v701_v19 = vpack.c.bf16 %v700_v18, %v700_v18  ;;  %v2003_v23 = vld [vmem:[%s2773_s5 + $0x20] sm:$0xff]  ;;  %v2006_v26 = vld [vmem:[%s2773_s5 + $0x38] sm:$0xff]  ;;  %v2005_v27 = vld [vmem:[%s2773_s5 + $0x30] sm:$0xff] }
  0x32   : > { %893 = vmatpush.bf16.msrb.mxu0 %v1992_v8  ;;  %1847 = vmatmul.msk.bf16.vlgmr.msra.gmra.mxu1 %vm748_vm0, %v699_v15  ;;  %v1999_v24 = vld [vmem:[%s2773_s5] sm:$0xff] }
  0x33   : > { %918 = vmatpush.bf16.msrb.mxu1 %v1994_v9  ;;  %1856 = vmatmul.msk.bf16.vlgmr.msra.gmra.mxu2 %vm748_vm0, %v699_v15  ;;  %v2078_v42 = vld [vmem:[%s2774_s6 + $0x1] ss:$0 sm:$0xff]  ;;  %v2077_v45 = vld [vmem:[%s2774_s6] ss:$0 sm:$0xff]  ;;  %v2084_v47 = vld [vmem:[%s2718_s7 + $0x3] ss:$0 sm:$0xff]  ;;  %s1680_s29 = scalar_lea.hbm %s2778_s19, %s2013_s2 }
  0x34   : > { %1865 = vmatmul.msk.bf16.vlgmr.msra.gmra.mxu3 %vm748_vm0, %v699_v15  ;;  %943 = vmatpush.bf16.msrb.mxu2 %v1996_v10  ;;  %v2079_v59 = vld [vmem:[%s2774_s6 + $0x2] ss:$0 sm:$0xff]  ;;  %v2080_v60 = vld [vmem:[%s2774_s6 + $0x3] ss:$0 sm:$0xff]  ;;  %v2085_v8 = vld [vmem:[%s2719_s8] ss:$0 sm:$0xff] }
  0x35   : > { %968 = vmatpush.bf16.msrb.mxu3 %v1998_v11  ;;  %v2086_v9 = vld [vmem:[%s2719_s8 + $0x1] ss:$0 sm:$0xff]  ;;  %v2087_v15 = vld [vmem:[%s2719_s8 + $0x2] ss:$0 sm:$0xff]  ;;  %s1683_s16 = sshll.u32 %s1680_s29, 4  ;;  %s1684_s16 = int_to_ptr.hbm [resolvable:$true] %s1683_s16 }
  0x36   : > { %894 = vmatpush.bf16.msrb.mxu0 %v1991_v13 }
  0x37   : > { %919 = vmatpush.bf16.msrb.mxu1 %v1993_v14 }
  0x38   : > { %944 = vmatpush.bf16.msrb.mxu2 %v1995_v16 }
  0x39   : > { %969 = vmatpush.bf16.msrb.mxu3 %v1997_v17 }
  0x3a   : > { %1025 = vmatpush.bf16.msra.mxu0 %v2000_v21 }
  0x3b   : > { %1050 = vmatpush.bf16.msra.mxu1 %v2002_v22 }
  0x3c   : > { %1075 = vmatpush.bf16.msra.mxu2 %v2004_v20 }
  0x3d   : > { %1100 = vmatpush.bf16.msra.mxu3 %v2006_v26  ;;  %v2088_v26 = vld [vmem:[%s2719_s8 + $0x3] ss:$0 sm:$0xff] }
  0x3e   : > { %1026 = vmatpush.bf16.msra.mxu0 %v1999_v24 }
  0x3f   : > { %1051 = vmatpush.bf16.msra.mxu1 %v2001_v25 }
  0x40   : > { %1076 = vmatpush.bf16.msra.mxu2 %v2003_v23 }
  0x41   : > { %1874 = vmatmul.msk.bf16.vlgmr.msrb.gmra.mxu0 %vm748_vm0, %v701_v19  ;;  %1101 = vmatpush.bf16.msra.mxu3 %v2005_v27 }
  0x42   : > { %1883 = vmatmul.msk.bf16.vlgmr.msrb.gmra.mxu1 %vm748_vm0, %v701_v19 }
  0x43   : > { %1892 = vmatmul.msk.bf16.vlgmr.msrb.gmra.mxu2 %vm748_vm0, %v701_v19 }
  0x44   : > { %1901 = vmatmul.msk.bf16.vlgmr.msrb.gmra.mxu3 %vm748_vm0, %v701_v19 }
  0x51   : > { %1910 = vmatmul.msk.bf16.vlgmr.msra.gmra.mxu0 %vm748_vm0, %v701_v19 }
  0x52   : > { %1919 = vmatmul.msk.bf16.vlgmr.msra.gmra.mxu1 %vm748_vm0, %v701_v19 }
  0x53   : > { %1928 = vmatmul.msk.bf16.vlgmr.msra.gmra.mxu2 %vm748_vm0, %v701_v19 }
  0x54   : > { %1937 = vmatmul.msk.bf16.vlgmr.msra.gmra.mxu3 %vm748_vm0, %v701_v19 }
  0xae   : > { %v761_v28 = vpop.f32.mrf.mxu0 }
  0xaf   : > { %v786_v29 = vpop.f32.mrf.mxu1  ;;  %v762_v53 = vadd.f32 %v2077_v45, %v761_v28 }
  0xb0   : > { %v787_v50 = vadd.f32 %v2078_v42, %v786_v29 }
  0xb1   : > { %v1107_v63 = vpack.c.bf16 %v762_v53, %v762_v53 }
  0xb2   : > { %v1108_v58 = vpack.c.bf16 %v787_v50, %v787_v50 }
  0xb6   : > { %v811_v30 = vpop.f32.mrf.mxu2  ;;  %v763_v32 = vpop.f32.mrf.mxu0 }
  0xb7   : > { %v836_v31 = vpop.f32.mrf.mxu3  ;;  %v788_v33 = vpop.f32.mrf.mxu1  ;;  %v812_v2 = vadd.f32 %v2079_v59, %v811_v30 }
  0xb8   : > { %v837_v3 = vadd.f32 %v2080_v60, %v836_v31  ;;  %v702_v33 = vld [vmem:[%s2775_s25] sm:$0xff]  ;;  %s2132_s25 = sshra.s32 %s1684_s16, 4  ;;  %s2133_s25 = int_to_ptr.hbm [resolvable:$true] %s2132_s25 }
  0xb9   : > { %v1109_v6 = vpack.c.bf16 %v812_v2, %v812_v2  ;;  %s2134_s0 = scalar_lea.hbm %s2133_s25, 32  ;;  %p2139_p1 = scmp.lt.s32.totalorder %s2133_s25, %s2778_s19 }
  0xba   : > { %v1110_v7 = vpack.c.bf16 %v837_v3, %v837_v3  ;;  %p2135_p12 = scmp.ne.s32.totalorder %s2133_s25, %s2134_s0 }
  0xbc   : > { %p2136_p13 = pnand %p2135_p12, %p2378_p4 }
  0xbe   : > { %v813_v36 = vpop.f32.mrf.mxu2  ;;  %v896_v38 = vpop.f32.mrf.mxu0  ;;  %p2137_p0 = pneg %p2136_p13 }
  0xbf   : > { %v838_v37 = vpop.f32.mrf.mxu3  ;;  %v921_v39 = vpop.f32.mrf.mxu1  ;;  %v897_v40 = vadd.f32 %v2081_v34, %v896_v38  ;;  %v703_v34 = vmul.f32 -3.5355338e+08, %v702_v33 }
  0xc0   : > { %v922_v41 = vadd.f32 %v2082_v35, %v921_v39 }
  0xc1   : > { %v1111_v43 = vpack.c.bf16 %v897_v40, %v897_v40 }
  0xc2   : > { %v1112_v44 = vpack.c.bf16 %v922_v41, %v922_v41 }
  0xc3   : > { %v1120_v48 = vsel %vm1115_vm1, %v1111_v43, 0 }
  0xc4   : > { %v1139_v49 = vsel %vm1115_vm1, %v1112_v44, 0  ;;  %1129 = vmatpush.bf16.xpose.msrb.mxu0 %v1120_v48 }
  0xc5   : > { %1148 = vmatpush.bf16.xpose.msrb.mxu1 %v1139_v49 }
  0xc6   : > { %v946_v51 = vpop.f32.mrf.mxu2  ;;  %v898_v56 = vpop.f32.mrf.mxu0 }
  0xc7   : > { %v971_v52 = vpop.f32.mrf.mxu3  ;;  %v947_v54 = vadd.f32 %v2083_v46, %v946_v51  ;;  %v923_v57 = vpop.f32.mrf.mxu1 }
  0xc8   : > { %v972_v55 = vadd.f32 %v2084_v47, %v971_v52 }
  0xc9   : > { %v1113_v61 = vpack.c.bf16 %v947_v54, %v947_v54 }
  0xca   : > { %v1114_v62 = vpack.c.bf16 %v972_v55, %v972_v55 }
  0xcb   : > { %v1158_v0 = vsel %vm1115_vm1, %v1113_v61, 0  ;;  %1938 = vmatmul.msk.bf16.vlgmr.msrb.gmra.mxu0 %vm1115_vm1, %v1107_v63 }
  0xcc   : > { %v1177_v1 = vsel %vm1115_vm1, %v1114_v62, 0  ;;  %1167 = vmatpush.bf16.xpose.msrb.mxu2 %v1158_v0  ;;  %1939 = vmatmul.msk.bf16.vlgmr.msrb.gmra.mxu1 %vm1115_vm1, %v1108_v58 }
  0xcd   : > { %1186 = vmatpush.bf16.xpose.msrb.mxu3 %v1177_v1 }
  0xce   : > { %v948_v4 = vpop.f32.mrf.mxu2  ;;  %v1028_v10 = vpop.f32.mrf.mxu0 }
  0xcf   : > { %v973_v5 = vpop.f32.mrf.mxu3  ;;  %v1053_v11 = vpop.f32.mrf.mxu1  ;;  %v1029_v13 = vadd.f32 %v2085_v8, %v1028_v10 }
  0xd0   : > { %v1054_v14 = vadd.f32 %v2086_v9, %v1053_v11 }
  0xd1   : > { %v1304_v16 = vpack.c.bf16 %v1029_v13, %v1029_v13 }
  0xd2   : > { %v1305_v17 = vpack.c.bf16 %v1054_v14, %v1054_v14 }
  0xd3   : > { %1940 = vmatmul.msk.bf16.vlgmr.msrb.gmra.mxu2 %vm1115_vm1, %v1109_v6  ;;  %v1313_v19 = vsel %vm1311_vm2, %v1304_v16, 0 }
  0xd4   : > { %1941 = vmatmul.msk.bf16.vlgmr.msrb.gmra.mxu3 %vm1115_vm1, %v1110_v7  ;;  %v1332_v20 = vsel %vm1311_vm2, %v1305_v17, 0  ;;  %1322 = vmatpush.bf16.msra.mxu0 %v1313_v19 }
  0xd5   : > { %1341 = vmatpush.bf16.msra.mxu1 %v1332_v20 }
  0xd6   : > { %v1078_v18 = vpop.f32.mrf.mxu2  ;;  %v1030_v23 = vpop.f32.mrf.mxu0 }
  0xd7   : > { %v1079_v21 = vadd.f32 %v2087_v15, %v1078_v18  ;;  %v1055_v24 = vpop.f32.mrf.mxu1  ;;  %v1103_v27 = vpop.f32.mrf.mxu3 }
  0xd8   : > { %v1104_v29 = vadd.f32 %v2088_v26, %v1103_v27 }
  0xd9   : > { %v1306_v22 = vpack.c.bf16 %v1079_v21, %v1079_v21 }
  0xda   : > { %v1307_v30 = vpack.c.bf16 %v1104_v29, %v1104_v29 }
  0xdb   : > { %v1351_v25 = vsel %vm1311_vm2, %v1306_v22, 0 }
  0xdc   : > { %1360 = vmatpush.bf16.msra.mxu2 %v1351_v25  ;;  %v1370_v31 = vsel %vm1311_vm2, %v1307_v30, 0 }
  0xdd   : > { %1379 = vmatpush.bf16.msra.mxu3 %v1370_v31 }
  0xde   : > { %v1080_v28 = vpop.f32.mrf.mxu2 }
  0xdf   : > { %v1105_v32 = vpop.f32.mrf.mxu3 }
 0x148   : > { %v1131_v35 = vpop.f32.mrf.mxu0 }
 0x149   : > { %v1150_v36 = vpop.f32.mrf.mxu1  ;;  %v1192_v37 = vmul.f32 0.35355338, %v1131_v35 }
 0x14a   : > { %v1193_v39 = vmul.f32 0.35355338, %v1150_v36 }
 0x14b   : > { %v1196_v38 = vadd.f32 %v1192_v37, %v703_v34 }
 0x14c   : > { %v1197_v43 = vadd.f32 %v1193_v39, %v703_v34 }
 0x14d   : > { %v1200_v40 = vsel %vm1115_vm1, %v1196_v38, -inf }
 0x14e   : > { %1201 = vmax.xlane.f32.xlu1 %v1200_v40  ;;  %v1203_v47 = vsel %vm1115_vm1, %v1197_v43, -inf }
 0x150   : > { %v1133_v41 = vpop.f32.mrf.mxu0 }
 0x151   : > { %v1152_v42 = vpop.f32.mrf.mxu1 }
 0x156   : > { %v1169_v44 = vpop.f32.mrf.mxu2  ;;  %1204 = vmax.xlane.f32.xlu1 %v1203_v47 }
 0x157   : > { %v1188_v45 = vpop.f32.mrf.mxu3  ;;  %v1194_v46 = vmul.f32 0.35355338, %v1169_v44 }
 0x158   : > { %v1195_v49 = vmul.f32 0.35355338, %v1188_v45 }
 0x159   : > { %v1198_v48 = vadd.f32 %v1194_v46, %v703_v34 }
 0x15a   : > { %v1199_v53 = vadd.f32 %v1195_v49, %v703_v34 }
 0x15b   : > { %v1206_v50 = vsel %vm1115_vm1, %v1198_v48, -inf }
 0x15c   : > { %1207 = vmax.xlane.f32.xlu0 %v1206_v50  ;;  %v1209_v54 = vsel %vm1115_vm1, %v1199_v53, -inf }
 0x15e   : > { %v1171_v51 = vpop.f32.mrf.mxu2 }
 0x15f   : > { %v1190_v52 = vpop.f32.mrf.mxu3 }
 0x164   : > { %1210 = vmax.xlane.f32.xlu0 %v1209_v54 }
 0x1c1   : > { %v1202_v55 = vpop.xlane.xlu1 %1201 }
 0x1c2   : > { %v1212_v56 = vsub.f32 %v1196_v38, %v1202_v55 }
 0x1c4   : > { %v1216_v57 = vmul.f32 1.442695, %v1212_v56 }
 0x1c6   : > { %2096 = vpow2.f32 %v1216_v57 }
 0x1c9   : > { %v1205_v58 = vpop.xlane.xlu1 %1204 }
 0x1ca   : > { %v1213_v59 = vsub.f32 %v1197_v43, %v1205_v58 }
 0x1cc   : > { %v2097_v60 = vpop.eup %2096  ;;  %v1218_v61 = vmul.f32 1.442695, %v1213_v59 }
 0x1cd   : > { %v1224_v63 = vsel %vm1115_vm1, %v2097_v60, 0.0 }
 0x1ce   : > { %2098 = vpow2.f32 %v1218_v61  ;;  %1225 = vadd.xlane.f32.xlu0 %v1224_v63 }
 0x1cf   : > { %v1208_v62 = vpop.xlane.xlu0 %1207 }
 0x1d0   : > { %v1214_v0 = vsub.f32 %v1198_v48, %v1208_v62 }
 0x1d2   : > { %v1220_v1 = vmul.f32 1.442695, %v1214_v0  ;;  %v1389_v0 = vld [vmem:[%s2720_s9] sm:$0xf] }
 0x1d4   : > { %2100 = vpow2.f32 %v1220_v1  ;;  %v2548_v2 = vpop.eup %2098  ;;  %v1397_v1 = vsel %vm1311_vm2, %v1389_v0, 0  ;;  %v2090_v0 = vld [vmem:[%s2722_s11] ss:$0 sm:$0xff] }
 0x1d5   : > { %v1227_v4 = vsel %vm1115_vm1, %v2548_v2, 0.0  ;;  %1406 = vmatpush.bf16.msrb.mxu0 %v1397_v1 }
 0x1d6   : > { %1228 = vadd.xlane.f32.xlu1 %v1227_v4  ;;  %v1391_v4 = vld [vmem:[%s2720_s9 + $0x8] sm:$0xf] }
 0x1d7   : > { %v1211_v3 = vpop.xlane.xlu0 %1210 }
 0x1d8   : > { %v1215_v5 = vsub.f32 %v1199_v53, %v1211_v3 }
 0x1da   : > { %v2552_v6 = vpop.eup %2100  ;;  %v1222_v7 = vmul.f32 1.442695, %v1215_v5  ;;  %v1435_v5 = vsel %vm1311_vm2, %v1391_v4, 0 }
 0x1db   : > { %v1230_v8 = vsel %vm1115_vm1, %v2552_v6, 0.0  ;;  %1444 = vmatpush.bf16.msrb.mxu2 %v1435_v5 }
 0x1dc   : > { %2102 = vpow2.f32 %v1222_v7  ;;  %1231 = vadd.xlane.f32.xlu2 %v1230_v8 }
 0x1e2   : > { %v2556_v9 = vpop.eup %2102 }
 0x1e3   : > { %v1233_v10 = vsel %vm1115_vm1, %v2556_v9, 0.0 }
 0x1e4   : > { %1234 = vadd.xlane.f32.xlu2 %v1233_v10 }
 0x241   : > { %v1226_v11 = vpop.xlane.xlu0 %1225 }
 0x242   : > { %2104 = vrcp.f32 %v1226_v11  ;;  %v1247_v17 = vand.u32 2147483648, %v1226_v11  ;;  %v1245_v19 = vand.u32 2147483647, %v1226_v11  ;;  %vm1241_vm4 = vweird.f32 %v1226_v11 }
 0x244   : > { %v1248_v23 = vor.u32 1.1754944e-38, %v1247_v17  ;;  %vm1246_vm6 = vcmp.eq.f32.partialorder %v1245_v19, 8.507059e+37 }
 0x248   : > { %v2105_v13 = vpop.eup %2104 }
 0x249   : > { %v1237_v14 = vmul.f32 %v2105_v13, %v1226_v11  ;;  %v1229_v15 = vpop.xlane.xlu1 %1228  ;;  %vm1242_vm3 = vweird.f32 %v2105_v13 }
 0x24a   : > { %2106 = vrcp.f32 %v1229_v15  ;;  %vm1243_vm5 = vmor %vm1241_vm4, %vm1242_vm3  ;;  %v1260_v30 = vand.u32 2147483647, %v1229_v15  ;;  %v1262_v31 = vand.u32 2147483648, %v1229_v15  ;;  %vm1256_vm8 = vweird.f32 %v1229_v15 }
 0x24b   : > { %v1238_v16 = vsub.f32 1.0, %v1237_v14 }
 0x24c   : > { %vm1261_vm10 = vcmp.eq.f32.partialorder %v1260_v30, 8.507059e+37  ;;  %v1263_v38 = vor.u32 1.1754944e-38, %v1262_v31 }
 0x24d   : > { %v1239_v18 = vmul.f32 %v2105_v13, %v1238_v16 }
 0x24f   : > { %v1232_v20 = vpop.xlane.xlu2 %1231  ;;  %v1240_v21 = vadd.f32 %v2105_v13, %v1239_v18 }
 0x250   : > { %2108 = vrcp.f32 %v1232_v20  ;;  %v2107_v22 = vpop.eup %2106  ;;  %v1277_v39 = vand.u32 2147483648, %v1232_v20  ;;  %v1275_v42 = vand.u32 2147483647, %v1232_v20  ;;  %vm1271_vm12 = vweird.f32 %v1232_v20 }
 0x251   : > { %v1244_v24 = vsel %vm1243_vm5, %v2105_v13, %v1240_v21  ;;  %v1252_v25 = vmul.f32 %v2107_v22, %v1229_v15  ;;  %vm1257_vm7 = vweird.f32 %v2107_v22 }
 0x252   : > { %v1249_v26 = vsel %vm1246_vm6, %v1248_v23, %v1244_v24  ;;  %vm1258_vm9 = vmor %vm1256_vm8, %vm1257_vm7  ;;  %v1278_v47 = vor.u32 1.1754944e-38, %v1277_v39  ;;  %vm1276_vm14 = vcmp.eq.f32.partialorder %v1275_v42, 8.507059e+37  ;;  %vm1596_vm8 = vcmask 523264  }
 0x253   : > { %v1250_v27 = vmul.f32 %v2097_v60, %v1249_v26  ;;  %v1253_v28 = vsub.f32 1.0, %v1252_v25 }
 0x255   : > { %v1254_v32 = vmul.f32 %v2107_v22, %v1253_v28  ;;  %v1300_v35 = vpack.c.bf16 %v1250_v27, %v1250_v27  ;;  %1296 = vst.msk [vmem:[%s2564_s21] sm:$0xff] %vm1115_vm1, %v1250_v27 }
 0x256   : > { %v2109_v29 = vpop.eup %2108 }
 0x257   : > { %v1267_v33 = vmul.f32 %v2109_v29, %v1232_v20  ;;  %v1235_v34 = vpop.xlane.xlu2 %1234  ;;  %v1255_v36 = vadd.f32 %v2107_v22, %v1254_v32  ;;  %1942 = vmatmul.msk.bf16.vlgmr.msra.gmra.mxu0 %vm1115_vm1, %v1300_v35  ;;  %vm1272_vm11 = vweird.f32 %v2109_v29 }
 0x258   : > { %2110 = vrcp.f32 %v1235_v34  ;;  %vm1273_vm13 = vmor %vm1271_vm12, %vm1272_vm11  ;;  %v1292_v54 = vand.u32 2147483648, %v1235_v34  ;;  %v1290_v56 = vand.u32 2147483647, %v1235_v34  ;;  %vm1286_vm3 = vweird.f32 %v1235_v34 }
 0x259   : > { %v1268_v37 = vsub.f32 1.0, %v1267_v33  ;;  %v1259_v40 = vsel %vm1258_vm9, %v2107_v22, %v1255_v36  ;;  %v2089_v33 = vld [vmem:[%s2721_s10] ss:$0 sm:$0xff] }
 0x25a   : > { %v1264_v43 = vsel %vm1261_vm10, %v1263_v38, %v1259_v40  ;;  %v1293_v59 = vor.u32 1.1754944e-38, %v1292_v54  ;;  %vm1291_vm5 = vcmp.eq.f32.partialorder %v1290_v56, 8.507059e+37  ;;  %v2230_v40 = vmov 32.0   ;;  %v2011_v56 = vld [vmem:[%s2726_s15 + $0x10] sm:$0xff] }
 0x25b   : > { %v1269_v41 = vmul.f32 %v2109_v29, %v1268_v37  ;;  %v1265_v44 = vmul.f32 %v2548_v2, %v1264_v43  ;;  %v1390_v2 = vld [vmem:[%s2720_s9 + $0x4] sm:$0xf]  ;;  %2112 = vrcp.f32 %v2230_v40 }
 0x25c   : > { %v1416_v3 = vsel %vm1311_vm2, %v1390_v2, 0  ;;  %v2091_v2 = vld [vmem:[%s2723_s12] ss:$0 sm:$0xff] }
 0x25d   : > { %v1270_v45 = vadd.f32 %v2109_v29, %v1269_v41  ;;  %v1301_v50 = vpack.c.bf16 %v1265_v44, %v1265_v44  ;;  %1297 = vst.msk [vmem:[%s2564_s21 + $0x8] sm:$0xff] %vm1115_vm1, %v1265_v44  ;;  %1425 = vmatpush.bf16.msrb.mxu1 %v1416_v3 }
 0x25e   : > { %v2111_v46 = vpop.eup %2110 }
 0x25f   : > { %v1274_v48 = vsel %vm1273_vm13, %v2109_v29, %v1270_v45  ;;  %v1282_v49 = vmul.f32 %v2111_v46, %v1235_v34  ;;  %1943 = vmatmul.msk.bf16.vlgmr.msra.gmra.mxu1 %vm1115_vm1, %v1301_v50  ;;  %vm1287_vm15 = vweird.f32 %v2111_v46 }
 0x260   : > { %v1279_v51 = vsel %vm1276_vm14, %v1278_v47, %v1274_v48  ;;  %vm1288_vm4 = vmor %vm1286_vm3, %vm1287_vm15 }
 0x261   : > { %v1280_v52 = vmul.f32 %v2552_v6, %v1279_v51  ;;  %v1283_v53 = vsub.f32 1.0, %v1282_v49  ;;  %v1392_v6 = vld [vmem:[%s2720_s9 + $0xc] sm:$0xf]  ;;  %v2113_v41 = vpop.eup %2112 }
 0x262   : > { %v1454_v7 = vsel %vm1311_vm2, %v1392_v6, 0  ;;  %v1488_v42 = vmul.f32 32.0, %v2113_v41  ;;  %v2008_v51 = vld [vmem:[%s2724_s13 + $0x8] sm:$0xff] }
 0x263   : > { %v1284_v55 = vmul.f32 %v2111_v46, %v1283_v53  ;;  %v1302_v57 = vpack.c.bf16 %v1280_v52, %v1280_v52  ;;  %1298 = vst.msk [vmem:[%s2564_s21 + $0x10] sm:$0xff] %vm1115_vm1, %v1280_v52  ;;  %1463 = vmatpush.bf16.msrb.mxu3 %v1454_v7  ;;  %1551 = vmatpush.bf16.msra.mxu0 %v2008_v51  ;;  %v2007_v52 = vld [vmem:[%s2724_s13] sm:$0xff]  ;;  %v2012_v53 = vld [vmem:[%s2726_s15 + $0x18] sm:$0xff]  ;;  %v2010_v7 = vld [vmem:[%s2726_s15 + $0x8] sm:$0xff] }
 0x264   : > { %v1489_v43 = vsub.f32 1.0, %v1488_v42  ;;  %1604 = vmatpush.bf16.msra.mxu1 %v2012_v53 }
 0x265   : > { %v1285_v58 = vadd.f32 %v2111_v46, %v1284_v55  ;;  %1944 = vmatmul.msk.bf16.vlgmr.msra.gmra.mxu2 %vm1115_vm1, %v1302_v57 }
 0x266   : > { %v1490_v44 = vmul.f32 %v2113_v41, %v1489_v43 }
 0x267   : > { %v1289_v60 = vsel %vm1288_vm4, %v2111_v46, %v1285_v58  ;;  %1552 = vmatpush.bf16.msra.mxu0 %v2007_v52 }
 0x268   : > { %v1294_v61 = vsel %vm1291_vm5, %v1293_v59, %v1289_v60  ;;  %v1491_v45 = vadd.f32 %v2113_v41, %v1490_v44  ;;  %1605 = vmatpush.bf16.msra.mxu1 %v2011_v56 }
 0x269   : > { %v1295_v62 = vmul.f32 %v2556_v9, %v1294_v61 }
 0x26b   : > { %v1303_v63 = vpack.c.bf16 %v1295_v62, %v1295_v62  ;;  %1299 = vst.msk [vmem:[%s2564_s21 + $0x18] sm:$0xff] %vm1115_vm1, %v1295_v62 }
 0x26c   : > { %1606 = vmatpush.bf16.msra.mxu1 %v2010_v7 }
 0x26d   : > { %1945 = vmatmul.msk.bf16.vlgmr.msra.gmra.mxu3 %vm1115_vm1, %v1303_v63 }
 0x2d4   : > { %v1324_v8 = vpop.f32.mrf.mxu0 }
 0x2d5   : > { %v1385_v9 = vpack.c.bf16 %v1324_v8, %v1324_v8  ;;  %v2009_v8 = vld [vmem:[%s2726_s15] sm:$0xff] }
 0x2d6   : > { %1607 = vmatpush.bf16.msra.mxu1 %v2009_v8 }
 0x2d7   : > { %1946 = vmatmul.msk.bf16.vlgmr.msrb.gmra.mxu0 %vm1115_vm1, %v1385_v9  ;;  %v2092_v9 = vld [vmem:[%s2725_s14] ss:$0 sm:$0xff] }
 0x2dc   : > { %v1326_v10 = vpop.f32.mrf.mxu0  ;;  %v1343_v11 = vpop.f32.mrf.mxu1 }
 0x2dd   : > { %v1386_v13 = vpack.c.bf16 %v1343_v11, %v1343_v11 }
 0x2df   : > { %1947 = vmatmul.msk.bf16.vlgmr.msrb.gmra.mxu1 %vm1115_vm1, %v1386_v13 }
 0x2e4   : > { %v1345_v14 = vpop.f32.mrf.mxu1 }
 0x2e8   : > { %v1362_v15 = vpop.f32.mrf.mxu2 }
 0x2e9   : > { %v1387_v16 = vpack.c.bf16 %v1362_v15, %v1362_v15 }
 0x2eb   : > { %1948 = vmatmul.msk.bf16.vlgmr.msrb.gmra.mxu2 %vm1115_vm1, %v1387_v16  ;;  %v2093_v16 = vld [vmem:[%s2776_s27] ss:$0 sm:$0xff]  ;;  %s2138_s27 = scalar_lea.hbm %s2778_s19, 64 }
 0x2ec   : > { %p2140_p2 = scmp.lt.s32.totalorder %s2138_s27, %s2134_s0 }
 0x2ee   : > { %p2141_p3 = por %p2140_p2, %p2139_p1 }
 0x2f0   : > { %v1364_v17 = vpop.f32.mrf.mxu2  ;;  %v1381_v18 = vpop.f32.mrf.mxu3  ;;  %p2142_p5 = pnand %p2141_p3, %p2137_p0 }
 0x2f1   : > { %v1388_v19 = vpack.c.bf16 %v1381_v18, %v1381_v18 }
 0x2f3   : > { %1949 = vmatmul.msk.bf16.vlgmr.msrb.gmra.mxu3 %vm1115_vm1, %v1388_v19  ;;  %vm1492_vm1 = vweird.f32 %v2113_v41 }
 0x2f4   : > { %v2610_v46 = vsel %vm1492_vm1, %v2113_v41, %v1491_v45 }
 0x2f8   : > { %v1383_v20 = vpop.f32.mrf.mxu3 }
 0x354   : > { %v1408_v21 = vpop.f32.mrf.mxu0 }
 0x355   : > { %v1469_v27 = vsel %vm748_vm0, %v1408_v21, 0.0 }
 0x35c   : > { %v1410_v22 = vpop.f32.mrf.mxu0  ;;  %v1427_v23 = vpop.f32.mrf.mxu1 }
 0x35d   : > { %v1470_v26 = vsel %vm748_vm0, %v1427_v23, 0.0 }
 0x35e   : > { %v1471_v29 = vadd.f32 %v1470_v26, %v1469_v27 }
 0x364   : > { %v1429_v24 = vpop.f32.mrf.mxu1 }
 0x36e   : > { %v1446_v25 = vpop.f32.mrf.mxu2 }
 0x36f   : > { %v1472_v28 = vsel %vm748_vm0, %v1446_v25, 0.0 }
 0x370   : > { %v1473_v30 = vadd.f32 %v1472_v28, %v1471_v29 }
 0x376   : > { %v1448_v31 = vpop.f32.mrf.mxu2  ;;  %v1465_v32 = vpop.f32.mrf.mxu3 }
 0x377   : > { %v1474_v34 = vsel %vm748_vm0, %v1465_v32, 0.0 }
 0x378   : > { %v1475_v35 = vadd.f32 %v1474_v34, %v1473_v30 }
 0x37a   : > { %v1480_v36 = vadd.f32 %v2089_v33, %v1475_v35 }
 0x37c   : > { %v1481_v37 = vadd.f32 %v1480_v36, %v2437_v12 }
 0x37e   : > { %v1467_v38 = vpop.f32.mrf.mxu3  ;;  %v1484_v39 = vsel %vm748_vm0, %v1481_v37, 0.0 }
 0x37f   : > { %1485 = vadd.xlane.f32.xlu2 %v1484_v39 }
 0x3f2   : > { %v1486_v47 = vpop.xlane.xlu2 %1485 }
 0x3f3   : > { %v1494_v48 = vmul.f32 %v2610_v46, %v1486_v47 }
 0x3f5   : > { %v1495_v49 = vsub.f32 %v1481_v37, %v1494_v48 }
 0x3f7   : > { %v1496_v50 = vmul.f32 %v1495_v49, %v1495_v49 }
 0x3f9   : > { %v1497_v12 = vsel %vm748_vm0, %v1496_v50, 0.0 }
 0x3fa   : > { %1498 = vadd.xlane.f32.xlu0 %v1497_v12 }
 0x46d   : > { %v1499_v54 = vpop.xlane.xlu0 %1498 }
 0x46e   : > { %v1500_v55 = vmul.f32 %v1499_v54, %v2610_v46 }
 0x470   : > { %v1501_v57 = vadd.f32 1e-05, %v1500_v55 }
 0x472   : > { %2114 = vrsqrt.f32 %v1501_v57  ;;  %vm1508_vm6 = vweird.f32 %v1501_v57 }
 0x478   : > { %v2115_v58 = vpop.eup %2114 }
 0x479   : > { %v1503_v59 = vmul.f32 %v2115_v58, %v1501_v57  ;;  %vm1509_vm2 = vweird.f32 %v2115_v58 }
 0x47a   : > { %vm1510_vm7 = vmor %vm1508_vm6, %vm1509_vm2 }
 0x47b   : > { %v1504_v60 = vmul.f32 %v2115_v58, %v1503_v59 }
 0x47d   : > { %v1505_v61 = vmul.f32 0.5, %v1504_v60 }
 0x47f   : > { %v1506_v62 = vsub.f32 1.5, %v1505_v61 }
 0x481   : > { %v1507_v63 = vmul.f32 %v2115_v58, %v1506_v62 }
 0x483   : > { %v1511_v1 = vsel %vm1510_vm7, %v2115_v58, %v1507_v63 }
 0x484   : > { %v1512_v3 = vmul.f32 %v1511_v1, %v1495_v49 }
 0x486   : > { %v1516_v4 = vmul.f32 %v2090_v0, %v1512_v3 }
 0x488   : > { %v1520_v5 = vadd.f32 %v2091_v2, %v1516_v4 }
 0x48a   : > { %v1521_v6 = vpack.c.bf16 %v1520_v5, %v1520_v5 }
 0x48c   : > { %1958 = vmatmul.msk.bf16.vlgmr.msra.gmra.mxu0 %vm748_vm0, %v1521_v6 }
 0x509   : > { %v1554_v10 = vpop.f32.mrf.mxu0 }
 0x50a   : > { %v1555_v11 = vadd.f32 %v2092_v9, %v1554_v10 }
 0x50c   : > { %v1558_v13 = vmax.f32 %v1555_v11, 0.0 }
 0x50e   : > { %v1559_v14 = vpack.c.bf16 %v1558_v13, %v1558_v13 }
 0x510   : > { %1975 = vmatmul.msk.bf16.vlgmr.msra.gmra.mxu1 %vm1596_vm8, %v1559_v14 }
 0x511   : > { %v1556_v15 = vpop.f32.mrf.mxu0 }
 0x58d   : > { %v1609_v17 = vpop.f32.mrf.mxu1 }
 0x58e   : > { %v1610_v18 = vadd.f32 %v2093_v16, %v1609_v17 }
 0x590   : > { %v1613_v19 = vadd.f32 %v1610_v18, %v1520_v5 }
 0x592   : > { %v1616_v20 = vsel %vm748_vm0, %v1613_v19, 0.0 }
 0x593   : > { %1617 = vadd.xlane.f32.xlu1 %v1616_v20 }
 0x595   : > { %v1611_v21 = vpop.f32.mrf.mxu1 }
 0x606   : > { %v1618_v22 = vpop.xlane.xlu1 %1617 }
 0x607   : > { %v1619_v23 = vmul.f32 %v1618_v22, %v2610_v46 }
 0x609   : > { %v1620_v24 = vsub.f32 %v1613_v19, %v1619_v23 }
 0x60b   : > { %v1621_v25 = vmul.f32 %v1620_v24, %v1620_v24 }
 0x60d   : > { %v1622_v26 = vsel %vm748_vm0, %v1621_v25, 0.0 }
 0x60e   : > { %1623 = vadd.xlane.f32.xlu2 %v1622_v26 }
 0x60f   : > { %2145 = shalt.err (!%p2142_p5)
}
 0x610   : > { %s2231_s21 = smov 128   ;;  %s2232_s2 = smov 8  }
 0x611   : > { %2015 = dma.vmem_to_hbm [thread:$0]  (%p2378_p4), %s1682_s17, 512, %s1684_s16, %s1653_s20, %s2231_s21, %s2231_s21, %s2232_s2  }
 0x612   : > { %s1826_s5 = sshll.u32 %s2561_s4, 3  ;;  %s1978_s6 = sshll.u32 %s2220_s24, 3 }
 0x613   : > { %s2779_s29 = sld [smem:[#allocation24_spill]]  ;;  %s674_s24 = scalar_lea.vmem [#allocation2], %s1826_s5 }
 0x614   : > { %s2780_s20 = sld [smem:[#allocation26_spill]]  ;;  %s1666_s27 = sshll.u32 %s674_s24, 4  ;;  %s1667_s27 = int_to_ptr.vmem [resolvable:$true] %s1666_s27 }
 0x615   : > { %s2781_s3 = sld [smem:[#allocation25_spill]]  ;;  %s1648_s2 = scalar_lea.sflag [#allocation3], %s2561_s4 }
 0x619   : > { %v2094_v36 = vld [vmem:[%s2779_s29] ss:$0 sm:$0xff] }
 0x61a   : > { %s1664_s25 = scalar_lea.hbm %s2780_s20, %s1978_s6  ;;  %s2166_s5 = scalar_lea.hbm %s2780_s20, 16 }
 0x61b   : > { %v2095_v39 = vld [vmem:[%s2781_s3] ss:$0 sm:$0xff]  ;;  %s1668_s21 = sshll.u32 %s1664_s25, 4  ;;  %s1669_s21 = int_to_ptr.hbm [resolvable:$true] %s1668_s21 }
 0x61c   : > { %s2160_s23 = sshra.s32 %s1669_s21, 4  ;;  %s2161_s23 = int_to_ptr.hbm [resolvable:$true] %s2160_s23 }
 0x61d   : > { %s2162_s6 = scalar_lea.hbm %s2161_s23, 8  ;;  %p2167_p10 = scmp.lt.s32.totalorder %s2161_s23, %s2780_s20 }
 0x61e   : > { %p2163_p6 = scmp.ne.s32.totalorder %s2161_s23, %s2162_s6  ;;  %p2168_p11 = scmp.lt.s32.totalorder %s2166_s5, %s2162_s6 }
 0x620   : > { %p2164_p7 = pnand %p2163_p6, %p2378_p4  ;;  %p2169_p12 = por %p2168_p11, %p2167_p10 }
 0x622   : > { %p2165_p9 = pneg %p2164_p7 }
 0x624   : > { %p2170_p13 = pnand %p2169_p12, %p2165_p9 }
 0x681   : > { %v1624_v27 = vpop.xlane.xlu2 %1623 }
 0x682   : > { %v1625_v28 = vmul.f32 %v1624_v27, %v2610_v46 }
 0x684   : > { %v1626_v29 = vadd.f32 1e-05, %v1625_v28 }
 0x686   : > { %2116 = vrsqrt.f32 %v1626_v29  ;;  %vm1633_vm10 = vweird.f32 %v1626_v29 }
 0x68c   : > { %v2117_v30 = vpop.eup %2116 }
 0x68d   : > { %v1628_v31 = vmul.f32 %v2117_v30, %v1626_v29  ;;  %vm1634_vm9 = vweird.f32 %v2117_v30 }
 0x68e   : > { %vm1635_vm11 = vmor %vm1633_vm10, %vm1634_vm9 }
 0x68f   : > { %v1629_v32 = vmul.f32 %v2117_v30, %v1628_v31 }
 0x691   : > { %v1630_v33 = vmul.f32 0.5, %v1629_v32 }
 0x693   : > { %v1631_v34 = vsub.f32 1.5, %v1630_v33 }
 0x695   : > { %v1632_v35 = vmul.f32 %v2117_v30, %v1631_v34 }
 0x697   : > { %v1636_v37 = vsel %vm1635_vm11, %v2117_v30, %v1632_v35 }
 0x698   : > { %v1637_v38 = vmul.f32 %v1636_v37, %v1620_v24 }
 0x69a   : > { %v1641_v40 = vmul.f32 %v2094_v36, %v1637_v38 }
 0x69c   : > { %v1645_v41 = vadd.f32 %v2095_v39, %v1641_v40 }
 0x69e   : > { %1646 = vst.msk [vmem:[%s674_s24] sm:$0xff] %vm748_vm0, %v1645_v41 }
 0x69f   : > { %2173 = shalt.err (!%p2170_p13)
}
 0x6a0   : > { %2014 = dma.vmem_to_hbm [thread:$0]  (%p2378_p4), %s1667_s27, 128, %s1669_s21, %s1648_s2  }
 0x6a1 PF: > { %s2782_s4 = sld [smem:[#allocation11_spill]] }
 0x6a2   : > { %s2783_s25 = sld [smem:[#allocation8_spill]] }
 0x6a7   : > { %p2025_p0 = scmp.ge.s32.totalorder %s2782_s4, 2 }
 0x6a8   : > { %s1698_s1 = sand.u32 1, %s2783_s25  }
 0x6a9   : > { %p2019_p1 = pnand %p2025_p0, %p2385_p8  ;;  %s1699_s3 = scalar_lea.sflag [#allocation3], %s1698_s1 }
 0x6ab   : > { %p2020_p2 = pneg %p2019_p1 }
 0x6ad   : > { %2199 = dma.done.wait (%p2020_p2), %s1699_s3, 128  }
 0x6ae   : > { %2201 = vsyncadd (%p2020_p2), %s1699_s3, 4294967168  ;;  %s1709_s24 = scalar_lea.sflag [#allocation5], %s1698_s1 }
 0x6af   : > { %2203 = dma.done.wait (%p2020_p2), %s1709_s24, 512  }
 0x6b0   : > { %2205 = vsyncadd (%p2020_p2), %s1709_s24, 4294966784  ;;  %s37_s25 = sadd.s32 1, %s2782_s4   ;;  %s2785_s26 = sld [smem:[#allocation9_spill]] }
 0x6b1   : > { %p34_p3 = scmp.ge.s32.totalorder %s37_s25, 4   ;;  %s2786_s23 = sld [smem:[#allocation15_spill]] }
 0x6b2   : > { %s2787_s24 = sld [smem:[#allocation10_spill]]  ;;  %s2789_s1 = smov %s2212_s22 }
 0x6b3   : > { %s2788_s2 = sld [smem:[#allocation12_spill]]  ;;  %36 = sbr.rel (!%p34_p3) target bundleno = 19 (0x13), region = 154 }
 0x6b6   : > { %s2790_s22 = smov %s2785_s26 }
 0x6b8   :  { %1715 = vsyncpa [#allocation3], 1 }
 0x6b9   :  { %1717 = vsyncpa [#allocation3 + $0x1], 1 }
 0x6ba   :  { %1718 = vsyncpa [#allocation5], 1 }
 0x6bb   :  { %1720 = vsyncpa [#allocation5 + $0x1], 1 }

// kernel: tpu_custom_call.1
= control target key start
LH: loop header
LB: loop body
LE: loop exit
PB: predicated region body
PF: predicated region fallthrough
CT: control target
= control target key end

     0   :  { %s2711_s0 = inlined_call_operand.vmem [shape: f32[2,8,32], index: 0, kind: input, shape index: {}]   ;;  %s2712_s1 = inlined_call_operand.vmem [shape: f32[2,8,32], index: 1, kind: input, shape index: {}]   ;;  %s2713_s2 = inlined_call_operand.vmem [shape: f32[8,8], index: 2, kind: input, shape index: {}]   ;;  %s2714_s3 = inlined_call_operand.vmem [shape: bf16[4,32,8], index: 3, kind: input, shape index: {}]   ;;  %s2715_s4 = inlined_call_operand.vmem [shape: bf16[4,32,8], index: 4, kind: input, shape index: {}]   ;;  %s2716_s5 = inlined_call_operand.vmem [shape: bf16[4,32,8], index: 5, kind: input, shape index: {}]   ;;  %s2717_s6 = inlined_call_operand.vmem [shape: f32[4,1,8], index: 6, kind: input, shape index: {}]   ;;  %s2718_s7 = inlined_call_operand.vmem [shape: f32[4,1,8], index: 7, kind: input, shape index: {}]   ;;  %s2719_s8 = inlined_call_operand.vmem [shape: f32[4,1,8], index: 8, kind: input, shape index: {}]   ;;  %s2720_s9 = inlined_call_operand.vmem [shape: bf16[4,8,32], index: 9, kind: input, shape index: {}]   ;;  %s2721_s10 = inlined_call_operand.vmem [shape: f32[1,32], index: 10, kind: input, shape index: {}]   ;;  %s2722_s11 = inlined_call_operand.vmem [shape: f32[1,32], index: 11, kind: input, shape index: {}]   ;;  %s2723_s12 = inlined_call_operand.vmem [shape: f32[1,32], index: 12, kind: input, shape index: {}]   ;;  %s2724_s13 = inlined_call_operand.vmem [shape: bf16[32,64], index: 13, kind: input, shape index: {}]   ;;  %s2725_s14 = inlined_call_operand.vmem [shape: f32[1,64], index: 14, kind: input, shape index: {}]   ;;  %s2726_s15 = inlined_call_operand.vmem [shape: bf16[64,32], index: 15, kind: input, shape index: {}]   ;;  %s2727_s16 = inlined_call_operand.vmem [shape: f32[1,32], index: 16, kind: input, shape index: {}]   ;;  %s2728_s17 = inlined_call_operand.vmem [shape: f32[1,32], index: 17, kind: input, shape index: {}]   ;;  %s2729_s18 = inlined_call_operand.vmem [shape: f32[1,32], index: 18, kind: input, shape index: {}]   ;;  %s2730_s19 = inlined_call_operand.hbm [shape: f32[2,8,32], index: 19, kind: output, shape index: {0}]   ;;  %s2731_s20 = inlined_call_operand.hbm [shape: f32[2,4,8,8], index: 20, kind: output, shape index: {1}]  }
   0x1   :  { %2745 = sst [smem:[#allocation16_spill]] %s2711_s0 }
   0x2   :  { %2746 = sst [smem:[#allocation17_spill]] %s2712_s1 }
   0x3   :  { %2747 = sst [smem:[#allocation18_spill]] %s2713_s2 }
   0x4   :  { %2748 = sst [smem:[#allocation19_spill]] %s2714_s3 }
   0x5   :  { %2749 = sst [smem:[#allocation20_spill]] %s2715_s4 }
   0x6   :  { %2750 = sst [smem:[#allocation21_spill]] %s2716_s5 }
   0x7   :  { %2751 = sst [smem:[#allocation22_spill]] %s2717_s6 }
   0x8   :  { %2752 = sst [smem:[#allocation23_spill]] %s2727_s16 }
   0x9   :  { %2753 = sst [smem:[#allocation24_spill]] %s2728_s17 }
   0xa   :  { %2754 = sst [smem:[#allocation25_spill]] %s2729_s18 }
   0xb   :  { %2755 = sst [smem:[#allocation26_spill]] %s2730_s19 }
   0xc   :  { %2756 = sst [smem:[#allocation27_spill]] %s2731_s20 }
   0xd   :  { %26 = vsyncpa [#allocation3], 0 }
   0xe   :  { %28 = vsyncpa [#allocation3 + $0x1], 0 }
   0xf   :  { %29 = vsyncpa [#allocation5], 0 }
  0x10   :  { %31 = vsyncpa [#allocation5 + $0x1], 0  ;;  %s2338_s1 = smov 0   ;;  %s2340_s22 = smov 0  }
  0x11   :  { %s2342_s23 = smov 0   ;;  %s2344_s24 = smov 0  }
  0x12   :  { %s2346_s2 = smov 0   ;;  %s2348_s25 = smov 0  }
  0x13 LB: > { %2757 = sst [smem:[#allocation8_spill]] %s2208_s1  ;;  %s1820_s3 = sadd.s32 4294967295, %s2228_s25   ;;  %s2228_s25 = sphi %s2348_s25, %s37_s25   ;;  %s2224_s2 = sphi %s2346_s2, %s2788_s2   ;;  %s2220_s24 = sphi %s2344_s24, %s2787_s24   ;;  %s2216_s23 = sphi %s2342_s23, %s2786_s23   ;;  %s2212_s22 = sphi %s2340_s22, %s2790_s22   ;;  %s2208_s1 = sphi %s2338_s1, %s2789_s1  }
  0x14   : > { %2758 = sst [smem:[#allocation9_spill]] %s2216_s23  ;;  %s1821_s26 = sadd.s32 4294967294, %s2228_s25  }
  0x15   : > { %2759 = sst [smem:[#allocation10_spill]] %s2224_s2  ;;  %s49_s27 = sadd.s32 1, %s2224_s2 }
  0x16   : > { %2760 = sst [smem:[#allocation11_spill]] %s2228_s25  ;;  %s474_s28 = sadd.s32 1, %s2216_s23 }
  0x17   : > { %p51_p0 = scmp.ge.s32.totalorder %s49_s27, 2  ;;  %p484_p1 = scmp.ne.s32.totalorder %s2216_s23, %s2212_s22 }
  0x18   : > { %p485_p2 = scmp.eq.s32.totalorder %s1820_s3, 1  ;;  %p490_p3 = scmp.ne.s32.totalorder %s2212_s22, %s2208_s1 }
  0x19   : > { %s2792_s27 = smov (%p51_p0, %s49_s27), 0  ;;  %p491_p5 = scmp.eq.s32.totalorder %s1821_s26, 1 }
  0x1a   : > { %2761 = sst [smem:[#allocation12_spill]] %s2792_s27  ;;  %p2378_p4 = por %p485_p2, %p484_p1 }
  0x1b   : > { %s469_s29 = ssub.s32 %s2224_s2, %s2792_s27  ;;  %p1825_p6 = scmp.ge.s32.totalorder %s2228_s25, 1 }
  0x1c   : > { %s2762_s4 = scalar_select %p2378_p4, 1, 0 }
  0x1d   : > { %p472_p7 = scmp.eq.s32.totalorder %s469_s29, 0  ;;  %p2385_p8 = por %p491_p5, %p490_p3 }
  0x1e   : > { %2763 = sst [smem:[#allocation13_spill]] %s2762_s4  ;;  %p609_p9 = scmp.lt.s32.totalorder %s2228_s25, 3 }
  0x1f   : > { %s2764_s30 = scalar_select %p2385_p8, 1, 0 }
  0x20   : > { %s2391_s0 = scalar_select %p472_p7, %s2216_s23, %s474_s28  }
  0x21   : > { %2765 = sst [smem:[#allocation14_spill]] %s2764_s30  ;;  %p610_p10 = pnand %p1825_p6, %p609_p9 }
  0x22   : > { %2766 = sst [smem:[#allocation15_spill]] %s2391_s0  ;;  %p682_p11 = scmp.lt.s32.totalorder (!%p610_p10), %s2220_s24, 1 }
  0x23   : > { %613 = sbr.rel (%p610_p10) target bundleno = 1697 (0x6a1), region = 96  ;;  %s2767_s1 = sld [smem:[#allocation19_spill]] (!%p610_p10) }
  0x24   : > { %s2769_s23 = sld [smem:[#allocation20_spill]] (!%p610_p10)  ;;  %s2013_s2 = sshll.u32 (!%p610_p10), %s2220_s24, 5 }
  0x25   : > { %s2771_s20 = sld [smem:[#allocation16_spill]] (!%p610_p10) }
  0x26   : > { %s2773_s5 = sld [smem:[#allocation21_spill]] (!%p610_p10) }
  0x27   : > { %s2774_s6 = sld [smem:[#allocation22_spill]] (!%p610_p10) }
  0x28   : > { %s2413_s19 = scalar_select %p682_p11, %s2220_s24, 1  ;;  %vm748_vm0 = vcmask 261120   ;;  %v2081_v34 = vld [vmem:[%s2718_s7] ss:$0 sm:$0xff]  ;;  %v2082_v35 = vld [vmem:[%s2718_s7 + $0x1] ss:$0 sm:$0xff] }
  0x29   : > { %s2768_s18 = smov %s2767_s1  ;;  %v1984_v0 = vld [vmem:[%s2767_s1 + $0x8] sm:$0xff]  ;;  %s2772_s1 = sld [smem:[#allocation17_spill]]  ;;  %vm1115_vm1 = vcmask 64512   ;;  %v2083_v46 = vld [vmem:[%s2718_s7 + $0x2] ss:$0 sm:$0xff]  ;;  %vm1311_vm2 = vcmask 1043456  }
  0x2a   : > { %v1986_v1 = vld [vmem:[%s2768_s18 + $0x18] sm:$0xff]  ;;  %v1988_v2 = vld [vmem:[%s2768_s18 + $0x28] sm:$0xff]  ;;  %758 = vmatpush.bf16.msra.mxu0 %v1984_v0  ;;  %v1983_v4 = vld [vmem:[%s2768_s18] sm:$0xff]  ;;  %s1828_s28 = sshll.u32 %s2413_s19, 3  ;;  %s2770_s30 = smov %s2769_s23 }
  0x2b   : > { %v1990_v3 = vld [vmem:[%s2768_s18 + $0x38] sm:$0xff]  ;;  %783 = vmatpush.bf16.msra.mxu1 %v1986_v1  ;;  %v1985_v5 = vld [vmem:[%s2768_s18 + $0x10] sm:$0xff]  ;;  %808 = vmatpush.bf16.msra.mxu2 %v1988_v2  ;;  %v1987_v6 = vld [vmem:[%s2768_s18 + $0x20] sm:$0xff]  ;;  %s688_s4 = scalar_lea.vmem %s2771_s20, %s1828_s28  ;;  %s2775_s25 = sld [smem:[#allocation18_spill]] }
  0x2c   : > { %833 = vmatpush.bf16.msra.mxu3 %v1990_v3  ;;  %v1989_v7 = vld [vmem:[%s2768_s18 + $0x30] sm:$0xff]  ;;  %v1992_v8 = vld [vmem:[%s2769_s23 + $0x8] sm:$0xff]  ;;  %v1994_v9 = vld [vmem:[%s2770_s30 + $0x18] sm:$0xff]  ;;  %s2776_s27 = sld [smem:[#allocation23_spill]] }
  0x2d   : > { %v1996_v10 = vld [vmem:[%s2770_s30 + $0x28] sm:$0xff]  ;;  %v1998_v11 = vld [vmem:[%s2770_s30 + $0x38] sm:$0xff]  ;;  %v2437_v12 = vld [vmem:[%s688_s4] sm:$0xff]  ;;  %s2561_s4 = sand.u32 1, %s2212_s22   ;;  %s2778_s19 = sld [smem:[#allocation27_spill]] }
  0x2e   : > { %759 = vmatpush.bf16.msra.mxu0 %v1983_v4  ;;  %v1991_v13 = vld [vmem:[%s2770_s30] sm:$0xff]  ;;  %v1993_v14 = vld [vmem:[%s2770_s30 + $0x10] sm:$0xff]  ;;  %v699_v15 = vpack.c.bf16 %v2437_v12, %v2437_v12  ;;  %v2004_v20 = vld [vmem:[%s2773_s5 + $0x28] sm:$0xff]  ;;  %s1827_s0 = sshll.u32 %s2561_s4, 5  ;;  %s1653_s20 = scalar_lea.sflag [#allocation5], %s2561_s4 }
  0x2f   : > { %784 = vmatpush.bf16.msra.mxu1 %v1985_v5  ;;  %809 = vmatpush.bf16.msra.mxu2 %v1987_v6  ;;  %v1995_v16 = vld [vmem:[%s2770_s30 + $0x20] sm:$0xff]  ;;  %v1997_v17 = vld [vmem:[%s2770_s30 + $0x30] sm:$0xff]  ;;  %s692_s3 = scalar_lea.vmem %s2772_s1, %s1828_s28  ;;  %v2000_v21 = vld [vmem:[%s2773_s5 + $0x8] sm:$0xff]  ;;  %s2564_s21 = scalar_lea.vmem [#allocation4], %s1827_s0 }
  0x30   : > { %834 = vmatpush.bf16.msra.mxu3 %v1989_v7  ;;  %v700_v18 = vld [vmem:[%s692_s3] sm:$0xff]  ;;  %v2002_v22 = vld [vmem:[%s2773_s5 + $0x18] sm:$0xff]  ;;  %v2001_v25 = vld [vmem:[%s2773_s5 + $0x10] sm:$0xff]  ;;  %s1681_s17 = sshll.u32 %s2564_s21, 4  ;;  %s1682_s17 = int_to_ptr.vmem [resolvable:$true] %s1681_s17 }
  0x31   : > { %1838 = vmatmul.msk.bf16.vlgmr.msra.gmra.mxu0 %vm748_vm0, %v699_v15  ;;  %v701_v19 = vpack.c.bf16 %v700_v18, %v700_v18  ;;  %v2003_v23 = vld [vmem:[%s2773_s5 + $0x20] sm:$0xff]  ;;  %v2006_v26 = vld [vmem:[%s2773_s5 + $0x38] sm:$0xff]  ;;  %v2005_v27 = vld [vmem:[%s2773_s5 + $0x30] sm:$0xff] }
  0x32   : > { %893 = vmatpush.bf16.msrb.mxu0 %v1992_v8  ;;  %1847 = vmatmul.msk.bf16.vlgmr.msra.gmra.mxu1 %vm748_vm0, %v699_v15  ;;  %v1999_v24 = vld [vmem:[%s2773_s5] sm:$0xff] }
  0x33   : > { %918 = vmatpush.bf16.msrb.mxu1 %v1994_v9  ;;  %1856 = vmatmul.msk.bf16.vlgmr.msra.gmra.mxu2 %vm748_vm0, %v699_v15  ;;  %v2078_v42 = vld [vmem:[%s2774_s6 + $0x1] ss:$0 sm:$0xff]  ;;  %v2077_v45 = vld [vmem:[%s2774_s6] ss:$0 sm:$0xff]  ;;  %v2084_v47 = vld [vmem:[%s2718_s7 + $0x3] ss:$0 sm:$0xff]  ;;  %s1680_s29 = scalar_lea.hbm %s2778_s19, %s2013_s2 }
  0x34   : > { %1865 = vmatmul.msk.bf16.vlgmr.msra.gmra.mxu3 %vm748_vm0, %v699_v15  ;;  %943 = vmatpush.bf16.msrb.mxu2 %v1996_v10  ;;  %v2079_v59 = vld [vmem:[%s2774_s6 + $0x2] ss:$0 sm:$0xff]  ;;  %v2080_v60 = vld [vmem:[%s2774_s6 + $0x3] ss:$0 sm:$0xff]  ;;  %v2085_v8 = vld [vmem:[%s2719_s8] ss:$0 sm:$0xff] }
  0x35   : > { %968 = vmatpush.bf16.msrb.mxu3 %v1998_v11  ;;  %v2086_v9 = vld [vmem:[%s2719_s8 + $0x1] ss:$0 sm:$0xff]  ;;  %v2087_v15 = vld [vmem:[%s2719_s8 + $0x2] ss:$0 sm:$0xff]  ;;  %s1683_s16 = sshll.u32 %s1680_s29, 4  ;;  %s1684_s16 = int_to_ptr.hbm [resolvable:$true] %s1683_s16 }
  0x36   : > { %894 = vmatpush.bf16.msrb.mxu0 %v1991_v13 }
  0x37   : > { %919 = vmatpush.bf16.msrb.mxu1 %v1993_v14 }
  0x38   : > { %944 = vmatpush.bf16.msrb.mxu2 %v1995_v16 }
  0x39   : > { %969 = vmatpush.bf16.msrb.mxu3 %v1997_v17 }
  0x3a   : > { %1025 = vmatpush.bf16.msra.mxu0 %v2000_v21 }
  0x3b   : > { %1050 = vmatpush.bf16.msra.mxu1 %v2002_v22 }
  0x3c   : > { %1075 = vmatpush.bf16.msra.mxu2 %v2004_v20 }
  0x3d   : > { %1100 = vmatpush.bf16.msra.mxu3 %v2006_v26  ;;  %v2088_v26 = vld [vmem:[%s2719_s8 + $0x3] ss:$0 sm:$0xff] }
  0x3e   : > { %1026 = vmatpush.bf16.msra.mxu0 %v1999_v24 }
  0x3f   : > { %1051 = vmatpush.bf16.msra.mxu1 %v2001_v25 }
  0x40   : > { %1076 = vmatpush.bf16.msra.mxu2 %v2003_v23 }
  0x41   : > { %1874 = vmatmul.msk.bf16.vlgmr.msrb.gmra.mxu0 %vm748_vm0, %v701_v19  ;;  %1101 = vmatpush.bf16.msra.mxu3 %v2005_v27 }
  0x42   : > { %1883 = vmatmul.msk.bf16.vlgmr.msrb.gmra.mxu1 %vm748_vm0, %v701_v19 }
  0x43   : > { %1892 = vmatmul.msk.bf16.vlgmr.msrb.gmra.mxu2 %vm748_vm0, %v701_v19 }
  0x44   : > { %1901 = vmatmul.msk.bf16.vlgmr.msrb.gmra.mxu3 %vm748_vm0, %v701_v19 }
  0x51   : > { %1910 = vmatmul.msk.bf16.vlgmr.msra.gmra.mxu0 %vm748_vm0, %v701_v19 }
  0x52   : > { %1919 = vmatmul.msk.bf16.vlgmr.msra.gmra.mxu1 %vm748_vm0, %v701_v19 }
  0x53   : > { %1928 = vmatmul.msk.bf16.vlgmr.msra.gmra.mxu2 %vm748_vm0, %v701_v19 }
  0x54   : > { %1937 = vmatmul.msk.bf16.vlgmr.msra.gmra.mxu3 %vm748_vm0, %v701_v19 }
  0xae   : > { %v761_v28 = vpop.f32.mrf.mxu0 }
  0xaf   : > { %v786_v29 = vpop.f32.mrf.mxu1  ;;  %v762_v53 = vadd.f32 %v2077_v45, %v761_v28 }
  0xb0   : > { %v787_v50 = vadd.f32 %v2078_v42, %v786_v29 }
  0xb1   : > { %v1107_v63 = vpack.c.bf16 %v762_v53, %v762_v53 }
  0xb2   : > { %v1108_v58 = vpack.c.bf16 %v787_v50, %v787_v50 }
  0xb6   : > { %v811_v30 = vpop.f32.mrf.mxu2  ;;  %v763_v32 = vpop.f32.mrf.mxu0 }
  0xb7   : > { %v836_v31 = vpop.f32.mrf.mxu3  ;;  %v788_v33 = vpop.f32.mrf.mxu1  ;;  %v812_v2 = vadd.f32 %v2079_v59, %v811_v30 }
  0xb8   : > { %v837_v3 = vadd.f32 %v2080_v60, %v836_v31  ;;  %v702_v33 = vld [vmem:[%s2775_s25] sm:$0xff]  ;;  %s2132_s25 = sshra.s32 %s1684_s16, 4  ;;  %s2133_s25 = int_to_ptr.hbm [resolvable:$true] %s2132_s25 }
  0xb9   : > { %v1109_v6 = vpack.c.bf16 %v812_v2, %v812_v2  ;;  %s2134_s0 = scalar_lea.hbm %s2133_s25, 32  ;;  %p2139_p1 = scmp.lt.s32.totalorder %s2133_s25, %s2778_s19 }
  0xba   : > { %v1110_v7 = vpack.c.bf16 %v837_v3, %v837_v3  ;;  %p2135_p12 = scmp.ne.s32.totalorder %s2133_s25, %s2134_s0 }
  0xbc   : > { %p2136_p13 = pnand %p2135_p12, %p2378_p4 }
  0xbe   : > { %v813_v36 = vpop.f32.mrf.mxu2  ;;  %v896_v38 = vpop.f32.mrf.mxu0  ;;  %p2137_p0 = pneg %p2136_p13 }
  0xbf   : > { %v838_v37 = vpop.f32.mrf.mxu3  ;;  %v921_v39 = vpop.f32.mrf.mxu1  ;;  %v897_v40 = vadd.f32 %v2081_v34, %v896_v38  ;;  %v703_v34 = vmul.f32 -3.5355338e+08, %v702_v33 }
  0xc0   : > { %v922_v41 = vadd.f32 %v2082_v35, %v921_v39 }
  0xc1   : > { %v1111_v43 = vpack.c.bf16 %v897_v40, %v897_v40 }
  0xc2   : > { %v1112_v44 = vpack.c.bf16 %v922_v41, %v922_v41 }
  0xc3   : > { %v1120_v48 = vsel %vm1115_vm1, %v1111_v43, 0 }
  0xc4   : > { %v1139_v49 = vsel %vm1115_vm1, %v1112_v44, 0  ;;  %1129 = vmatpush.bf16.xpose.msrb.mxu0 %v1120_v48 }
  0xc5   : > { %1148 = vmatpush.bf16.xpose.msrb.mxu1 %v1139_v49 }
  0xc6   : > { %v946_v51 = vpop.f32.mrf.mxu2  ;;  %v898_v56 = vpop.f32.mrf.mxu0 }
  0xc7   : > { %v971_v52 = vpop.f32.mrf.mxu3  ;;  %v947_v54 = vadd.f32 %v2083_v46, %v946_v51  ;;  %v923_v57 = vpop.f32.mrf.mxu1 }
  0xc8   : > { %v972_v55 = vadd.f32 %v2084_v47, %v971_v52 }
  0xc9   : > { %v1113_v61 = vpack.c.bf16 %v947_v54, %v947_v54 }
  0xca   : > { %v1114_v62 = vpack.c.bf16 %v972_v55, %v972_v55 }
  0xcb   : > { %v1158_v0 = vsel %vm1115_vm1, %v1113_v61, 0  ;;  %1938 = vmatmul.msk.bf16.vlgmr.msrb.gmra.mxu0 %vm1115_vm1, %v1107_v63 }
  0xcc   : > { %v1177_v1 = vsel %vm1115_vm1, %v1114_v62, 0  ;;  %1167 = vmatpush.bf16.xpose.msrb.mxu2 %v1158_v0  ;;  %1939 = vmatmul.msk.bf16.vlgmr.msrb.gmra.mxu1 %vm1115_vm1, %v1108_v58 }
  0xcd   : > { %1186 = vmatpush.bf16.xpose.msrb.mxu3 %v1177_v1 }
  0xce   : > { %v948_v4 = vpop.f32.mrf.mxu2  ;;  %v1028_v10 = vpop.f32.mrf.mxu0 }
  0xcf   : > { %v973_v5 = vpop.f32.mrf.mxu3  ;;  %v1053_v11 = vpop.f32.mrf.mxu1  ;;  %v1029_v13 = vadd.f32 %v2085_v8, %v1028_v10 }
  0xd0   : > { %v1054_v14 = vadd.f32 %v2086_v9, %v1053_v11 }
  0xd1   : > { %v1304_v16 = vpack.c.bf16 %v1029_v13, %v1029_v13 }
  0xd2   : > { %v1305_v17 = vpack.c.bf16 %v1054_v14, %v1054_v14 }
  0xd3   : > { %1940 = vmatmul.msk.bf16.vlgmr.msrb.gmra.mxu2 %vm1115_vm1, %v1109_v6  ;;  %v1313_v19 = vsel %vm1311_vm2, %v1304_v16, 0 }
  0xd4   : > { %1941 = vmatmul.msk.bf16.vlgmr.msrb.gmra.mxu3 %vm1115_vm1, %v1110_v7  ;;  %v1332_v20 = vsel %vm1311_vm2, %v1305_v17, 0  ;;  %1322 = vmatpush.bf16.msra.mxu0 %v1313_v19 }
  0xd5   : > { %1341 = vmatpush.bf16.msra.mxu1 %v1332_v20 }
  0xd6   : > { %v1078_v18 = vpop.f32.mrf.mxu2  ;;  %v1030_v23 = vpop.f32.mrf.mxu0 }
  0xd7   : > { %v1079_v21 = vadd.f32 %v2087_v15, %v1078_v18  ;;  %v1055_v24 = vpop.f32.mrf.mxu1  ;;  %v1103_v27 = vpop.f32.mrf.mxu3 }
  0xd8   : > { %v1104_v29 = vadd.f32 %v2088_v26, %v1103_v27 }
  0xd9   : > { %v1306_v22 = vpack.c.bf16 %v1079_v21, %v1079_v21 }
  0xda   : > { %v1307_v30 = vpack.c.bf16 %v1104_v29, %v1104_v29 }
  0xdb   : > { %v1351_v25 = vsel %vm1311_vm2, %v1306_v22, 0 }
  0xdc   : > { %1360 = vmatpush.bf16.msra.mxu2 %v1351_v25  ;;  %v1370_v31 = vsel %vm1311_vm2, %v1307_v30, 0 }
  0xdd   : > { %1379 = vmatpush.bf16.msra.mxu3 %v1370_v31 }
  0xde   : > { %v1080_v28 = vpop.f32.mrf.mxu2 }
  0xdf   : > { %v1105_v32 = vpop.f32.mrf.mxu3 }
 0x148   : > { %v1131_v35 = vpop.f32.mrf.mxu0 }
 0x149   : > { %v1150_v36 = vpop.f32.mrf.mxu1  ;;  %v1192_v37 = vmul.f32 0.35355338, %v1131_v35 }
 0x14a   : > { %v1193_v39 = vmul.f32 0.35355338, %v1150_v36 }
 0x14b   : > { %v1196_v38 = vadd.f32 %v1192_v37, %v703_v34 }
 0x14c   : > { %v1197_v43 = vadd.f32 %v1193_v39, %v703_v34 }
 0x14d   : > { %v1200_v40 = vsel %vm1115_vm1, %v1196_v38, -inf }
 0x14e   : > { %1201 = vmax.xlane.f32.xlu1 %v1200_v40  ;;  %v1203_v47 = vsel %vm1115_vm1, %v1197_v43, -inf }
 0x150   : > { %v1133_v41 = vpop.f32.mrf.mxu0 }
 0x151   : > { %v1152_v42 = vpop.f32.mrf.mxu1 }
 0x156   : > { %v1169_v44 = vpop.f32.mrf.mxu2  ;;  %1204 = vmax.xlane.f32.xlu1 %v1203_v47 }
 0x157   : > { %v1188_v45 = vpop.f32.mrf.mxu3  ;;  %v1194_v46 = vmul.f32 0.35355338, %v1169_v44 }
 0x158   : > { %v1195_v49 = vmul.f32 0.35355338, %v1188_v45 }
 0x159   : > { %v1198_v48 = vadd.f32 %v1194_v46, %v703_v34 }
 0x15a   : > { %v1199_v53 = vadd.f32 %v1195_v49, %v703_v34 }
 0x15b   : > { %v1206_v50 = vsel %vm1115_vm1, %v1198_v48, -inf }
 0x15c   : > { %1207 = vmax.xlane.f32.xlu0 %v1206_v50  ;;  %v1209_v54 = vsel %vm1115_vm1, %v1199_v53, -inf }
 0x15e   : > { %v1171_v51 = vpop.f32.mrf.mxu2 }
 0x15f   : > { %v1190_v52 = vpop.f32.mrf.mxu3 }
 0x164   : > { %1210 = vmax.xlane.f32.xlu0 %v1209_v54 }
 0x1c1   : > { %v1202_v55 = vpop.xlane.xlu1 %1201 }
 0x1c2   : > { %v1212_v56 = vsub.f32 %v1196_v38, %v1202_v55 }
 0x1c4   : > { %v1216_v57 = vmul.f32 1.442695, %v1212_v56 }
 0x1c6   : > { %2096 = vpow2.f32 %v1216_v57 }
 0x1c9   : > { %v1205_v58 = vpop.xlane.xlu1 %1204 }
 0x1ca   : > { %v1213_v59 = vsub.f32 %v1197_v43, %v1205_v58 }
 0x1cc   : > { %v2097_v60 = vpop.eup %2096  ;;  %v1218_v61 = vmul.f32 1.442695, %v1213_v59 }
 0x1cd   : > { %v1224_v63 = vsel %vm1115_vm1, %v2097_v60, 0.0 }
 0x1ce   : > { %2098 = vpow2.f32 %v1218_v61  ;;  %1225 = vadd.xlane.f32.xlu0 %v1224_v63 }
 0x1cf   : > { %v1208_v62 = vpop.xlane.xlu0 %1207 }
 0x1d0   : > { %v1214_v0 = vsub.f32 %v1198_v48, %v1208_v62 }
 0x1d2   : > { %v1220_v1 = vmul.f32 1.442695, %v1214_v0  ;;  %v1389_v0 = vld [vmem:[%s2720_s9] sm:$0xf] }
 0x1d4   : > { %2100 = vpow2.f32 %v1220_v1  ;;  %v2548_v2 = vpop.eup %2098  ;;  %v1397_v1 = vsel %vm1311_vm2, %v1389_v0, 0  ;;  %v2090_v0 = vld [vmem:[%s2722_s11] ss:$0 sm:$0xff] }
 0x1d5   : > { %v1227_v4 = vsel %vm1115_vm1, %v2548_v2, 0.0  ;;  %1406 = vmatpush.bf16.msrb.mxu0 %v1397_v1 }
 0x1d6   : > { %1228 = vadd.xlane.f32.xlu1 %v1227_v4  ;;  %v1391_v4 = vld [vmem:[%s2720_s9 + $0x8] sm:$0xf] }
 0x1d7   : > { %v1211_v3 = vpop.xlane.xlu0 %1210 }
 0x1d8   : > { %v1215_v5 = vsub.f32 %v1199_v53, %v1211_v3 }
 0x1da   : > { %v2552_v6 = vpop.eup %2100  ;;  %v1222_v7 = vmul.f32 1.442695, %v1215_v5  ;;  %v1435_v5 = vsel %vm1311_vm2, %v1391_v4, 0 }
 0x1db   : > { %v1230_v8 = vsel %vm1115_vm1, %v2552_v6, 0.0  ;;  %1444 = vmatpush.bf16.msrb.mxu2 %v1435_v5 }
 0x1dc   : > { %2102 = vpow2.f32 %v1222_v7  ;;  %1231 = vadd.xlane.f32.xlu2 %v1230_v8 }
 0x1e2   : > { %v2556_v9 = vpop.eup %2102 }
 0x1e3   : > { %v1233_v10 = vsel %vm1115_vm1, %v2556_v9, 0.0 }
 0x1e4   : > { %1234 = vadd.xlane.f32.xlu2 %v1233_v10 }
 0x241   : > { %v1226_v11 = vpop.xlane.xlu0 %1225 }
 0x242   : > { %2104 = vrcp.f32 %v1226_v11  ;;  %v1247_v17 = vand.u32 2147483648, %v1226_v11  ;;  %v1245_v19 = vand.u32 2147483647, %v1226_v11  ;;  %vm1241_vm4 = vweird.f32 %v1226_v11 }
 0x244   : > { %v1248_v23 = vor.u32 1.1754944e-38, %v1247_v17  ;;  %vm1246_vm6 = vcmp.eq.f32.partialorder %v1245_v19, 8.507059e+37 }
 0x248   : > { %v2105_v13 = vpop.eup %2104 }
 0x249   : > { %v1237_v14 = vmul.f32 %v2105_v13, %v1226_v11  ;;  %v1229_v15 = vpop.xlane.xlu1 %1228  ;;  %vm1242_vm3 = vweird.f32 %v2105_v13 }
 0x24a   : > { %2106 = vrcp.f32 %v1229_v15  ;;  %vm1243_vm5 = vmor %vm1241_vm4, %vm1242_vm3  ;;  %v1260_v30 = vand.u32 2147483647, %v1229_v15  ;;  %v1262_v31 = vand.u32 2147483648, %v1229_v15  ;;  %vm1256_vm8 = vweird.f32 %v1229_v15 }
 0x24b   : > { %v1238_v16 = vsub.f32 1.0, %v1237_v14 }
 0x24c   : > { %vm1261_vm10 = vcmp.eq.f32.partialorder %v1260_v30, 8.507059e+37  ;;  %v1263_v38 = vor.u32 1.1754944e-38, %v1262_v31 }
 0x24d   : > { %v1239_v18 = vmul.f32 %v2105_v13, %v1238_v16 }
 0x24f   : > { %v1232_v20 = vpop.xlane.xlu2 %1231  ;;  %v1240_v21 = vadd.f32 %v2105_v13, %v1239_v18 }
 0x250   : > { %2108 = vrcp.f32 %v1232_v20  ;;  %v2107_v22 = vpop.eup %2106  ;;  %v1277_v39 = vand.u32 2147483648, %v1232_v20  ;;  %v1275_v42 = vand.u32 2147483647, %v1232_v20  ;;  %vm1271_vm12 = vweird.f32 %v1232_v20 }
 0x251   : > { %v1244_v24 = vsel %vm1243_vm5, %v2105_v13, %v1240_v21  ;;  %v1252_v25 = vmul.f32 %v2107_v22, %v1229_v15  ;;  %vm1257_vm7 = vweird.f32 %v2107_v22 }
 0x252   : > { %v1249_v26 = vsel %vm1246_vm6, %v1248_v23, %v1244_v24  ;;  %vm1258_vm9 = vmor %vm1256_vm8, %vm1257_vm7  ;;  %v1278_v47 = vor.u32 1.1754944e-38, %v1277_v39  ;;  %vm1276_vm14 = vcmp.eq.f32.partialorder %v1275_v42, 8.507059e+37  ;;  %vm1596_vm8 = vcmask 523264  }
 0x253   : > { %v1250_v27 = vmul.f32 %v2097_v60, %v1249_v26  ;;  %v1253_v28 = vsub.f32 1.0, %v1252_v25 }
 0x255   : > { %v1254_v32 = vmul.f32 %v2107_v22, %v1253_v28  ;;  %v1300_v35 = vpack.c.bf16 %v1250_v27, %v1250_v27  ;;  %1296 = vst.msk [vmem:[%s2564_s21] sm:$0xff] %vm1115_vm1, %v1250_v27 }
 0x256   : > { %v2109_v29 = vpop.eup %2108 }
 0x257   : > { %v1267_v33 = vmul.f32 %v2109_v29, %v1232_v20  ;;  %v1235_v34 = vpop.xlane.xlu2 %1234  ;;  %v1255_v36 = vadd.f32 %v2107_v22, %v1254_v32  ;;  %1942 = vmatmul.msk.bf16.vlgmr.msra.gmra.mxu0 %vm1115_vm1, %v1300_v35  ;;  %vm1272_vm11 = vweird.f32 %v2109_v29 }
 0x258   : > { %2110 = vrcp.f32 %v1235_v34  ;;  %vm1273_vm13 = vmor %vm1271_vm12, %vm1272_vm11  ;;  %v1292_v54 = vand.u32 2147483648, %v1235_v34  ;;  %v1290_v56 = vand.u32 2147483647, %v1235_v34  ;;  %vm1286_vm3 = vweird.f32 %v1235_v34 }
 0x259   : > { %v1268_v37 = vsub.f32 1.0, %v1267_v33  ;;  %v1259_v40 = vsel %vm1258_vm9, %v2107_v22, %v1255_v36  ;;  %v2089_v33 = vld [vmem:[%s2721_s10] ss:$0 sm:$0xff] }
 0x25a   : > { %v1264_v43 = vsel %vm1261_vm10, %v1263_v38, %v1259_v40  ;;  %v1293_v59 = vor.u32 1.1754944e-38, %v1292_v54  ;;  %vm1291_vm5 = vcmp.eq.f32.partialorder %v1290_v56, 8.507059e+37  ;;  %v2230_v40 = vmov 32.0   ;;  %v2011_v56 = vld [vmem:[%s2726_s15 + $0x10] sm:$0xff] }
 0x25b   : > { %v1269_v41 = vmul.f32 %v2109_v29, %v1268_v37  ;;  %v1265_v44 = vmul.f32 %v2548_v2, %v1264_v43  ;;  %v1390_v2 = vld [vmem:[%s2720_s9 + $0x4] sm:$0xf]  ;;  %2112 = vrcp.f32 %v2230_v40 }
 0x25c   : > { %v1416_v3 = vsel %vm1311_vm2, %v1390_v2, 0  ;;  %v2091_v2 = vld [vmem:[%s2723_s12] ss:$0 sm:$0xff] }
 0x25d   : > { %v1270_v45 = vadd.f32 %v2109_v29, %v1269_v41  ;;  %v1301_v50 = vpack.c.bf16 %v1265_v44, %v1265_v44  ;;  %1297 = vst.msk [vmem:[%s2564_s21 + $0x8] sm:$0xff] %vm1115_vm1, %v1265_v44  ;;  %1425 = vmatpush.bf16.msrb.mxu1 %v1416_v3 }
 0x25e   : > { %v2111_v46 = vpop.eup %2110 }
 0x25f   : > { %v1274_v48 = vsel %vm1273_vm13, %v2109_v29, %v1270_v45  ;;  %v1282_v49 = vmul.f32 %v2111_v46, %v1235_v34  ;;  %1943 = vmatmul.msk.bf16.vlgmr.msra.gmra.mxu1 %vm1115_vm1, %v1301_v50  ;;  %vm1287_vm15 = vweird.f32 %v2111_v46 }
 0x260   : > { %v1279_v51 = vsel %vm1276_vm14, %v1278_v47, %v1274_v48  ;;  %vm1288_vm4 = vmor %vm1286_vm3, %vm1287_vm15 }
 0x261   : > { %v1280_v52 = vmul.f32 %v2552_v6, %v1279_v51  ;;  %v1283_v53 = vsub.f32 1.0, %v1282_v49  ;;  %v1392_v6 = vld [vmem:[%s2720_s9 + $0xc] sm:$0xf]  ;;  %v2113_v41 = vpop.eup %2112 }
 0x262   : > { %v1454_v7 = vsel %vm1311_vm2, %v1392_v6, 0  ;;  %v1488_v42 = vmul.f32 32.0, %v2113_v41  ;;  %v2008_v51 = vld [vmem:[%s2724_s13 + $0x8] sm:$0xff] }
 0x263   : > { %v1284_v55 = vmul.f32 %v2111_v46, %v1283_v53  ;;  %v1302_v57 = vpack.c.bf16 %v1280_v52, %v1280_v52  ;;  %1298 = vst.msk [vmem:[%s2564_s21 + $0x10] sm:$0xff] %vm1115_vm1, %v1280_v52  ;;  %1463 = vmatpush.bf16.msrb.mxu3 %v1454_v7  ;;  %1551 = vmatpush.bf16.msra.mxu0 %v2008_v51  ;;  %v2007_v52 = vld [vmem:[%s2724_s13] sm:$0xff]  ;;  %v2012_v53 = vld [vmem:[%s2726_s15 + $0x18] sm:$0xff]  ;;  %v2010_v7 = vld [vmem:[%s2726_s15 + $0x8] sm:$0xff] }
 0x264   : > { %v1489_v43 = vsub.f32 1.0, %v1488_v42  ;;  %1604 = vmatpush.bf16.msra.mxu1 %v2012_v53 }
 0x265   : > { %v1285_v58 = vadd.f32 %v2111_v46, %v1284_v55  ;;  %1944 = vmatmul.msk.bf16.vlgmr.msra.gmra.mxu2 %vm1115_vm1, %v1302_v57 }
 0x266   : > { %v1490_v44 = vmul.f32 %v2113_v41, %v1489_v43 }
 0x267   : > { %v1289_v60 = vsel %vm1288_vm4, %v2111_v46, %v1285_v58  ;;  %1552 = vmatpush.bf16.msra.mxu0 %v2007_v52 }
 0x268   : > { %v1294_v61 = vsel %vm1291_vm5, %v1293_v59, %v1289_v60  ;;  %v1491_v45 = vadd.f32 %v2113_v41, %v1490_v44  ;;  %1605 = vmatpush.bf16.msra.mxu1 %v2011_v56 }
 0x269   : > { %v1295_v62 = vmul.f32 %v2556_v9, %v1294_v61 }
 0x26b   : > { %v1303_v63 = vpack.c.bf16 %v1295_v62, %v1295_v62  ;;  %1299 = vst.msk [vmem:[%s2564_s21 + $0x18] sm:$0xff] %vm1115_vm1, %v1295_v62 }
 0x26c   : > { %1606 = vmatpush.bf16.msra.mxu1 %v2010_v7 }
 0x26d   : > { %1945 = vmatmul.msk.bf16.vlgmr.msra.gmra.mxu3 %vm1115_vm1, %v1303_v63 }
 0x2d4   : > { %v1324_v8 = vpop.f32.mrf.mxu0 }
 0x2d5   : > { %v1385_v9 = vpack.c.bf16 %v1324_v8, %v1324_v8  ;;  %v2009_v8 = vld [vmem:[%s2726_s15] sm:$0xff] }
 0x2d6   : > { %1607 = vmatpush.bf16.msra.mxu1 %v2009_v8 }
 0x2d7   : > { %1946 = vmatmul.msk.bf16.vlgmr.msrb.gmra.mxu0 %vm1115_vm1, %v1385_v9  ;;  %v2092_v9 = vld [vmem:[%s2725_s14] ss:$0 sm:$0xff] }
 0x2dc   : > { %v1326_v10 = vpop.f32.mrf.mxu0  ;;  %v1343_v11 = vpop.f32.mrf.mxu1 }
 0x2dd   : > { %v1386_v13 = vpack.c.bf16 %v1343_v11, %v1343_v11 }
 0x2df   : > { %1947 = vmatmul.msk.bf16.vlgmr.msrb.gmra.mxu1 %vm1115_vm1, %v1386_v13 }
 0x2e4   : > { %v1345_v14 = vpop.f32.mrf.mxu1 }
 0x2e8   : > { %v1362_v15 = vpop.f32.mrf.mxu2 }
 0x2e9   : > { %v1387_v16 = vpack.c.bf16 %v1362_v15, %v1362_v15 }
 0x2eb   : > { %1948 = vmatmul.msk.bf16.vlgmr.msrb.gmra.mxu2 %vm1115_vm1, %v1387_v16  ;;  %v2093_v16 = vld [vmem:[%s2776_s27] ss:$0 sm:$0xff]  ;;  %s2138_s27 = scalar_lea.hbm %s2778_s19, 64 }
 0x2ec   : > { %p2140_p2 = scmp.lt.s32.totalorder %s2138_s27, %s2134_s0 }
 0x2ee   : > { %p2141_p3 = por %p2140_p2, %p2139_p1 }
 0x2f0   : > { %v1364_v17 = vpop.f32.mrf.mxu2  ;;  %v1381_v18 = vpop.f32.mrf.mxu3  ;;  %p2142_p5 = pnand %p2141_p3, %p2137_p0 }
 0x2f1   : > { %v1388_v19 = vpack.c.bf16 %v1381_v18, %v1381_v18 }
 0x2f3   : > { %1949 = vmatmul.msk.bf16.vlgmr.msrb.gmra.mxu3 %vm1115_vm1, %v1388_v19  ;;  %vm1492_vm1 = vweird.f32 %v2113_v41 }
 0x2f4   : > { %v2610_v46 = vsel %vm1492_vm1, %v2113_v41, %v1491_v45 }
 0x2f8   : > { %v1383_v20 = vpop.f32.mrf.mxu3 }
 0x354   : > { %v1408_v21 = vpop.f32.mrf.mxu0 }
 0x355   : > { %v1469_v27 = vsel %vm748_vm0, %v1408_v21, 0.0 }
 0x35c   : > { %v1410_v22 = vpop.f32.mrf.mxu0  ;;  %v1427_v23 = vpop.f32.mrf.mxu1 }
 0x35d   : > { %v1470_v26 = vsel %vm748_vm0, %v1427_v23, 0.0 }
 0x35e   : > { %v1471_v29 = vadd.f32 %v1470_v26, %v1469_v27 }
 0x364   : > { %v1429_v24 = vpop.f32.mrf.mxu1 }
 0x36e   : > { %v1446_v25 = vpop.f32.mrf.mxu2 }
 0x36f   : > { %v1472_v28 = vsel %vm748_vm0, %v1446_v25, 0.0 }
 0x370   : > { %v1473_v30 = vadd.f32 %v1472_v28, %v1471_v29 }
 0x376   : > { %v1448_v31 = vpop.f32.mrf.mxu2  ;;  %v1465_v32 = vpop.f32.mrf.mxu3 }
 0x377   : > { %v1474_v34 = vsel %vm748_vm0, %v1465_v32, 0.0 }
 0x378   : > { %v1475_v35 = vadd.f32 %v1474_v34, %v1473_v30 }
 0x37a   : > { %v1480_v36 = vadd.f32 %v2089_v33, %v1475_v35 }
 0x37c   : > { %v1481_v37 = vadd.f32 %v1480_v36, %v2437_v12 }
 0x37e   : > { %v1467_v38 = vpop.f32.mrf.mxu3  ;;  %v1484_v39 = vsel %vm748_vm0, %v1481_v37, 0.0 }
 0x37f   : > { %1485 = vadd.xlane.f32.xlu2 %v1484_v39 }
 0x3f2   : > { %v1486_v47 = vpop.xlane.xlu2 %1485 }
 0x3f3   : > { %v1494_v48 = vmul.f32 %v2610_v46, %v1486_v47 }
 0x3f5   : > { %v1495_v49 = vsub.f32 %v1481_v37, %v1494_v48 }
 0x3f7   : > { %v1496_v50 = vmul.f32 %v1495_v49, %v1495_v49 }
 0x3f9   : > { %v1497_v12 = vsel %vm748_vm0, %v1496_v50, 0.0 }
 0x3fa   : > { %1498 = vadd.xlane.f32.xlu0 %v1497_v12 }
 0x46d   : > { %v1499_v54 = vpop.xlane.xlu0 %1498 }
 0x46e   : > { %v1500_v55 = vmul.f32 %v1499_v54, %v2610_v46 }
 0x470   : > { %v1501_v57 = vadd.f32 1e-05, %v1500_v55 }
 0x472   : > { %2114 = vrsqrt.f32 %v1501_v57  ;;  %vm1508_vm6 = vweird.f32 %v1501_v57 }
 0x478   : > { %v2115_v58 = vpop.eup %2114 }
 0x479   : > { %v1503_v59 = vmul.f32 %v2115_v58, %v1501_v57  ;;  %vm1509_vm2 = vweird.f32 %v2115_v58 }
 0x47a   : > { %vm1510_vm7 = vmor %vm1508_vm6, %vm1509_vm2 }
 0x47b   : > { %v1504_v60 = vmul.f32 %v2115_v58, %v1503_v59 }
 0x47d   : > { %v1505_v61 = vmul.f32 0.5, %v1504_v60 }
 0x47f   : > { %v1506_v62 = vsub.f32 1.5, %v1505_v61 }
 0x481   : > { %v1507_v63 = vmul.f32 %v2115_v58, %v1506_v62 }
 0x483   : > { %v1511_v1 = vsel %vm1510_vm7, %v2115_v58, %v1507_v63 }
 0x484   : > { %v1512_v3 = vmul.f32 %v1511_v1, %v1495_v49 }
 0x486   : > { %v1516_v4 = vmul.f32 %v2090_v0, %v1512_v3 }
 0x488   : > { %v1520_v5 = vadd.f32 %v2091_v2, %v1516_v4 }
 0x48a   : > { %v1521_v6 = vpack.c.bf16 %v1520_v5, %v1520_v5 }
 0x48c   : > { %1958 = vmatmul.msk.bf16.vlgmr.msra.gmra.mxu0 %vm748_vm0, %v1521_v6 }
 0x509   : > { %v1554_v10 = vpop.f32.mrf.mxu0 }
 0x50a   : > { %v1555_v11 = vadd.f32 %v2092_v9, %v1554_v10 }
 0x50c   : > { %v1558_v13 = vmax.f32 %v1555_v11, 0.0 }
 0x50e   : > { %v1559_v14 = vpack.c.bf16 %v1558_v13, %v1558_v13 }
 0x510   : > { %1975 = vmatmul.msk.bf16.vlgmr.msra.gmra.mxu1 %vm1596_vm8, %v1559_v14 }
 0x511   : > { %v1556_v15 = vpop.f32.mrf.mxu0 }
 0x58d   : > { %v1609_v17 = vpop.f32.mrf.mxu1 }
 0x58e   : > { %v1610_v18 = vadd.f32 %v2093_v16, %v1609_v17 }
 0x590   : > { %v1613_v19 = vadd.f32 %v1610_v18, %v1520_v5 }
 0x592   : > { %v1616_v20 = vsel %vm748_vm0, %v1613_v19, 0.0 }
 0x593   : > { %1617 = vadd.xlane.f32.xlu1 %v1616_v20 }
 0x595   : > { %v1611_v21 = vpop.f32.mrf.mxu1 }
 0x606   : > { %v1618_v22 = vpop.xlane.xlu1 %1617 }
 0x607   : > { %v1619_v23 = vmul.f32 %v1618_v22, %v2610_v46 }
 0x609   : > { %v1620_v24 = vsub.f32 %v1613_v19, %v1619_v23 }
 0x60b   : > { %v1621_v25 = vmul.f32 %v1620_v24, %v1620_v24 }
 0x60d   : > { %v1622_v26 = vsel %vm748_vm0, %v1621_v25, 0.0 }
 0x60e   : > { %1623 = vadd.xlane.f32.xlu2 %v1622_v26 }
 0x60f   : > { %2145 = shalt.err (!%p2142_p5)
}
 0x610   : > { %s2231_s21 = smov 128   ;;  %s2232_s2 = smov 8  }
 0x611   : > { %2015 = dma.vmem_to_hbm [thread:$0]  (%p2378_p4), %s1682_s17, 512, %s1684_s16, %s1653_s20, %s2231_s21, %s2231_s21, %s2232_s2  }
 0x612   : > { %s1826_s5 = sshll.u32 %s2561_s4, 3  ;;  %s1978_s6 = sshll.u32 %s2220_s24, 3 }
 0x613   : > { %s2779_s29 = sld [smem:[#allocation24_spill]]  ;;  %s674_s24 = scalar_lea.vmem [#allocation2], %s1826_s5 }
 0x614   : > { %s2780_s20 = sld [smem:[#allocation26_spill]]  ;;  %s1666_s27 = sshll.u32 %s674_s24, 4  ;;  %s1667_s27 = int_to_ptr.vmem [resolvable:$true] %s1666_s27 }
 0x615   : > { %s2781_s3 = sld [smem:[#allocation25_spill]]  ;;  %s1648_s2 = scalar_lea.sflag [#allocation3], %s2561_s4 }
 0x619   : > { %v2094_v36 = vld [vmem:[%s2779_s29] ss:$0 sm:$0xff] }
 0x61a   : > { %s1664_s25 = scalar_lea.hbm %s2780_s20, %s1978_s6  ;;  %s2166_s5 = scalar_lea.hbm %s2780_s20, 16 }
 0x61b   : > { %v2095_v39 = vld [vmem:[%s2781_s3] ss:$0 sm:$0xff]  ;;  %s1668_s21 = sshll.u32 %s1664_s25, 4  ;;  %s1669_s21 = int_to_ptr.hbm [resolvable:$true] %s1668_s21 }
 0x61c   : > { %s2160_s23 = sshra.s32 %s1669_s21, 4  ;;  %s2161_s23 = int_to_ptr.hbm [resolvable:$true] %s2160_s23 }
 0x61d   : > { %s2162_s6 = scalar_lea.hbm %s2161_s23, 8  ;;  %p2167_p10 = scmp.lt.s32.totalorder %s2161_s23, %s2780_s20 }
 0x61e   : > { %p2163_p6 = scmp.ne.s32.totalorder %s2161_s23, %s2162_s6  ;;  %p2168_p11 = scmp.lt.s32.totalorder %s2166_s5, %s2162_s6 }
 0x620   : > { %p2164_p7 = pnand %p2163_p6, %p2378_p4  ;;  %p2169_p12 = por %p2168_p11, %p2167_p10 }
 0x622   : > { %p2165_p9 = pneg %p2164_p7 }
 0x624   : > { %p2170_p13 = pnand %p2169_p12, %p2165_p9 }
 0x681   : > { %v1624_v27 = vpop.xlane.xlu2 %1623 }
 0x682   : > { %v1625_v28 = vmul.f32 %v1624_v27, %v2610_v46 }
 0x684   : > { %v1626_v29 = vadd.f32 1e-05, %v1625_v28 }
 0x686   : > { %2116 = vrsqrt.f32 %v1626_v29  ;;  %vm1633_vm10 = vweird.f32 %v1626_v29 }
 0x68c   : > { %v2117_v30 = vpop.eup %2116 }
 0x68d   : > { %v1628_v31 = vmul.f32 %v2117_v30, %v1626_v29  ;;  %vm1634_vm9 = vweird.f32 %v2117_v30 }
 0x68e   : > { %vm1635_vm11 = vmor %vm1633_vm10, %vm1634_vm9 }
 0x68f   : > { %v1629_v32 = vmul.f32 %v2117_v30, %v1628_v31 }
 0x691   : > { %v1630_v33 = vmul.f32 0.5, %v1629_v32 }
 0x693   : > { %v1631_v34 = vsub.f32 1.5, %v1630_v33 }
 0x695   : > { %v1632_v35 = vmul.f32 %v2117_v30, %v1631_v34 }
 0x697   : > { %v1636_v37 = vsel %vm1635_vm11, %v2117_v30, %v1632_v35 }
 0x698   : > { %v1637_v38 = vmul.f32 %v1636_v37, %v1620_v24 }
 0x69a   : > { %v1641_v40 = vmul.f32 %v2094_v36, %v1637_v38 }
 0x69c   : > { %v1645_v41 = vadd.f32 %v2095_v39, %v1641_v40 }
 0x69e   : > { %1646 = vst.msk [vmem:[%s674_s24] sm:$0xff] %vm748_vm0, %v1645_v41 }
 0x69f   : > { %2173 = shalt.err (!%p2170_p13)
}
 0x6a0   : > { %2014 = dma.vmem_to_hbm [thread:$0]  (%p2378_p4), %s1667_s27, 128, %s1669_s21, %s1648_s2  }
 0x6a1 PF: > { %s2782_s4 = sld [smem:[#allocation11_spill]] }
 0x6a2   : > { %s2783_s25 = sld [smem:[#allocation8_spill]] }
 0x6a7   : > { %p2025_p0 = scmp.ge.s32.totalorder %s2782_s4, 2 }
 0x6a8   : > { %s1698_s1 = sand.u32 1, %s2783_s25  }
 0x6a9   : > { %p2019_p1 = pnand %p2025_p0, %p2385_p8  ;;  %s1699_s3 = scalar_lea.sflag [#allocation3], %s1698_s1 }
 0x6ab   : > { %p2020_p2 = pneg %p2019_p1 }
 0x6ad   : > { %2199 = dma.done.wait (%p2020_p2), %s1699_s3, 128  }
 0x6ae   : > { %2201 = vsyncadd (%p2020_p2), %s1699_s3, 4294967168  ;;  %s1709_s24 = scalar_lea.sflag [#allocation5], %s1698_s1 }
 0x6af   : > { %2203 = dma.done.wait (%p2020_p2), %s1709_s24, 512  }
 0x6b0   : > { %2205 = vsyncadd (%p2020_p2), %s1709_s24, 4294966784  ;;  %s37_s25 = sadd.s32 1, %s2782_s4   ;;  %s2785_s26 = sld [smem:[#allocation9_spill]] }
 0x6b1   : > { %p34_p3 = scmp.ge.s32.totalorder %s37_s25, 4   ;;  %s2786_s23 = sld [smem:[#allocation15_spill]] }
 0x6b2   : > { %s2787_s24 = sld [smem:[#allocation10_spill]]  ;;  %s2789_s1 = smov %s2212_s22 }
 0x6b3   : > { %s2788_s2 = sld [smem:[#allocation12_spill]]  ;;  %36 = sbr.rel (!%p34_p3) target bundleno = 19 (0x13), region = 154 }
 0x6b6   : > { %s2790_s22 = smov %s2785_s26 }
 0x6b8   :  { %1715 = vsyncpa [#allocation3], 1 }
 0x6b9   :  { %1717 = vsyncpa [#allocation3 + $0x1], 1 }
 0x6ba   :  { %1718 = vsyncpa [#allocation5], 1 }
 0x6bb   :  { %1720 = vsyncpa [#allocation5 + $0x1], 1 }

</bundles_post_ra>
